<compile_context>
chip_gen: v5e
topology: v5e:2x2
jax: 0.10.0
libtpu: 0.0.40
codegen_flags: <defaults>
</compile_context>

<pallas_src>
import jax
import jax.numpy as jnp
from jax.experimental import pallas as pl
from jax.experimental.pallas import tpu as pltpu


def mlp_kernel(x_ref, w1_ref, b1_ref, w2_ref, b2_ref, o_ref):
    # fc1: (TB, D)[bf16] @ (D, Hp)[bf16] -> f32 accumulate, + (1, Hp) bias
    h = jnp.dot(x_ref[...], w1_ref[...], preferred_element_type=jnp.float32)
    h = jnp.maximum(h + b1_ref[...], 0.0)
    # fc2: tiny (TB, Hp)[f32] @ (Hp, C)[f32] + (1, C) bias
    out = jnp.dot(h, w2_ref[...], preferred_element_type=jnp.float32)
    o_ref[...] = (out + b2_ref[...]).astype(o_ref.dtype)


def neural_net_forward(x, w1, b1, w2, b2, *, tile_b=128):
    """x: (B, D) f32; w1: (D, H); b1: (H,); w2: (H, C); b2: (C,)."""
    B, D = x.shape
    H = w1.shape[1]
    C = w2.shape[1]

    # --- pad hidden dim to the 128-lane boundary (zero padding is exact) ---
    H_pad = ((H + 127) // 128) * 128
    if H_pad != H:
        w1 = jnp.pad(w1, ((0, 0), (0, H_pad - H)))
        b1 = jnp.pad(b1, ((0, H_pad - H),))
        w2 = jnp.pad(w2, ((0, H_pad - H), (0, 0)))

    # --- batch tiling: tile must be a multiple of 8 sublanes ---
    tb = min(tile_b, max(8, ((B + 7) // 8) * 8))
    B_pad = ((B + tb - 1) // tb) * tb
    if B_pad != B:
        x = jnp.pad(x, ((0, B_pad - B), (0, 0)))

    # --- dtype prep: bf16 for the bandwidth-dominant operands, f32 elsewhere ---
    x_bf = x.astype(jnp.bfloat16)
    w1_bf = w1.astype(jnp.bfloat16)
    b1_2d = b1.reshape(1, H_pad).astype(jnp.float32)
    w2_f = w2.astype(jnp.float32)          # 128 x C -> ~1 KB, keep full precision
    b2_2d = b2.reshape(1, C).astype(jnp.float32)

    grid = (B_pad // tb,)
    out = pl.pallas_call(
        mlp_kernel,
        out_shape=jax.ShapeDtypeStruct((B_pad, C), jnp.float32),
        grid=grid,
        in_specs=[
            pl.BlockSpec((tb, D), lambda i: (i, 0)),        # x tile per grid step
            pl.BlockSpec((D, H_pad), lambda i: (0, 0)),     # W1 resident across steps
            pl.BlockSpec((1, H_pad), lambda i: (0, 0)),
            pl.BlockSpec((H_pad, C), lambda i: (0, 0)),
            pl.BlockSpec((1, C), lambda i: (0, 0)),
        ],
        out_specs=pl.BlockSpec((tb, C), lambda i: (i, 0)),
        compiler_params=pltpu.CompilerParams(
            dimension_semantics=("parallel",),
        ),
    )(x_bf, w1_bf, b1_2d, w2_f, b2_2d)
    return out[:B]


def init_params(key, input_size, hidden_size, num_classes):
    """Deterministic init mimicking torch.nn.Linear default (uniform +-1/sqrt(fan_in))."""
    k1, k2, k3, k4 = jax.random.split(key, 4)
    bound1 = 1.0 / jnp.sqrt(jnp.float32(input_size))
    bound2 = 1.0 / jnp.sqrt(jnp.float32(hidden_size))
    # Stored already transposed to (in, out) for the kernel.
    w1 = jax.random.uniform(k1, (input_size, hidden_size), jnp.float32, -bound1, bound1)
    b1 = jax.random.uniform(k2, (hidden_size,), jnp.float32, -bound1, bound1)
    w2 = jax.random.uniform(k3, (hidden_size, num_classes), jnp.float32, -bound2, bound2)
    b2 = jax.random.uniform(k4, (num_classes,), jnp.float32, -bound2, bound2)
    return w1, b1, w2, b2


if __name__ == "__main__":
    input_size = 6920
    hidden_size = 100
    num_classes = 2
    batch = 8

    key = jax.random.PRNGKey(0)
    kx, kp = jax.random.split(key)
    x = jax.random.normal(kx, (batch, input_size), jnp.float32)
    w1, b1, w2, b2 = init_params(kp, input_size, hidden_size, num_classes)

    out = neural_net_forward(x, w1, b1, w2, b2)
    out = jax.block_until_ready(out)
    assert out.shape == (batch, num_classes)

    # Reference with the same bf16-quantized x/W1 (tight check of kernel math).
    x_q = x.astype(jnp.bfloat16).astype(jnp.float32)
    w1_q = w1.astype(jnp.bfloat16).astype(jnp.float32)
    ref_q = jnp.maximum(x_q @ w1_q + b1, 0.0) @ w2 + b2
    assert jnp.allclose(out, ref_q, atol=1e-2, rtol=1e-2)

    # Full-precision torch-equivalent reference (loose: bounds bf16 weight error).
    ref = jnp.maximum(x @ w1 + b1, 0.0) @ w2 + b2
    assert jnp.allclose(out, ref, atol=5e-2, rtol=5e-2)

    print("KERNEL_OK")
</pallas_src>

<mosaic_0001>
module attributes {stable_mosaic.version = 11 : i64} {
  func.func @mlp_kernel(%arg0: i32, %arg1: memref<8x6920xbf16, #tpu.memory_space<vmem>>, %arg2: memref<6920x128xbf16, #tpu.memory_space<vmem>>, %arg3: memref<1x128xf32, #tpu.memory_space<vmem>>, %arg4: memref<128x2xf32, #tpu.memory_space<vmem>>, %arg5: memref<1x2xf32, #tpu.memory_space<vmem>>, %arg6: memref<8x2xf32, #tpu.memory_space<vmem>>) attributes {dimension_semantics = [#tpu.dimension_semantics<parallel>], iteration_bounds = array<i64: 1>, scalar_prefetch = 0 : i64, scratch_operands = 0 : i64, tpu.core_type = #tpu.core_type<tc>, window_params = [{transform_indices = @transform_0, window_bounds = array<i64: 8, 6920>}, {pipeline_mode = #tpu.pipeline_mode<synchronous>, transform_indices = @transform_1, window_bounds = array<i64: 6920, 128>}, {pipeline_mode = #tpu.pipeline_mode<synchronous>, transform_indices = @transform_2, window_bounds = array<i64: 1, 128>}, {pipeline_mode = #tpu.pipeline_mode<synchronous>, transform_indices = @transform_3, window_bounds = array<i64: 128, 2>}, {pipeline_mode = #tpu.pipeline_mode<synchronous>, transform_indices = @transform_4, window_bounds = array<i64: 1, 2>}, {transform_indices = @transform_5, window_bounds = array<i64: 8, 2>}]} {
    %c0 = arith.constant 0 : index
    %c0_0 = arith.constant 0 : index
    %0 = vector.load %arg1[%c0, %c0_0] : memref<8x6920xbf16, #tpu.memory_space<vmem>>, vector<8x6920xbf16>
    %c0_1 = arith.constant 0 : index
    %c0_2 = arith.constant 0 : index
    %1 = vector.load %arg2[%c0_1, %c0_2] : memref<6920x128xbf16, #tpu.memory_space<vmem>>, vector<6920x128xbf16>
    %cst = arith.constant dense<0.000000e+00> : vector<8x128xf32>
    %2 = tpu.matmul %0, %1, %cst {dimension_numbers = #tpu.dot_dimension_numbers<[1], [0], [0], [1], [0, 0, 1, 1], [], []>} : vector<8x6920xbf16>, vector<6920x128xbf16>, vector<8x128xf32> -> vector<8x128xf32>
    %c0_3 = arith.constant 0 : index
    %c0_4 = arith.constant 0 : index
    %3 = vector.load %arg3[%c0_3, %c0_4] : memref<1x128xf32, #tpu.memory_space<vmem>>, vector<1x128xf32>
    %4 = vector.broadcast %3 : vector<1x128xf32> to vector<8x128xf32>
    %5 = arith.addf %2, %4 : vector<8x128xf32>
    %cst_5 = arith.constant 0.000000e+00 : f32
    %6 = vector.broadcast %cst_5 : f32 to vector<8x128xf32>
    %7 = arith.maximumf %5, %6 : vector<8x128xf32>
    %c0_6 = arith.constant 0 : index
    %c0_7 = arith.constant 0 : index
    %8 = vector.load %arg4[%c0_6, %c0_7] : memref<128x2xf32, #tpu.memory_space<vmem>>, vector<128x2xf32>
    %cst_8 = arith.constant dense<0.000000e+00> : vector<8x2xf32>
    %9 = tpu.matmul %7, %8, %cst_8 {dimension_numbers = #tpu.dot_dimension_numbers<[1], [0], [0], [1], [0, 0, 1, 1], [], []>} : vector<8x128xf32>, vector<128x2xf32>, vector<8x2xf32> -> vector<8x2xf32>
    %c0_9 = arith.constant 0 : index
    %c0_10 = arith.constant 0 : index
    %10 = vector.load %arg5[%c0_9, %c0_10] : memref<1x2xf32, #tpu.memory_space<vmem>>, vector<1x2xf32>
    %11 = vector.broadcast %10 : vector<1x2xf32> to vector<8x2xf32>
    %12 = arith.addf %9, %11 : vector<8x2xf32>
    %c0_11 = arith.constant 0 : index
    %c0_12 = arith.constant 0 : index
    %13 = vector.load %arg6[%c0_11, %c0_12] : memref<8x2xf32, #tpu.memory_space<vmem>>, vector<8x2xf32>
    tpu.vector_store %arg6[%c0_11, %c0_12], %12 {strides = array<i32>} : memref<8x2xf32, #tpu.memory_space<vmem>>, vector<8x2xf32>,
    return
  }
  func.func @transform_0(%arg0: i32) -> (i32, i32) {
    %c0_i32 = arith.constant 0 : i32
    %c0_i32_0 = arith.constant 0 : i32
    return %arg0, %c0_i32 : i32, i32
  }
  func.func @transform_1(%arg0: i32) -> (i32, i32) {
    %c0_i32 = arith.constant 0 : i32
    %c0_i32_0 = arith.constant 0 : i32
    %c0_i32_1 = arith.constant 0 : i32
    return %c0_i32, %c0_i32_0 : i32, i32
  }
  func.func @transform_2(%arg0: i32) -> (i32, i32) {
    %c0_i32 = arith.constant 0 : i32
    %c0_i32_0 = arith.constant 0 : i32
    %c0_i32_1 = arith.constant 0 : i32
    return %c0_i32, %c0_i32_0 : i32, i32
  }
  func.func @transform_3(%arg0: i32) -> (i32, i32) {
    %c0_i32 = arith.constant 0 : i32
    %c0_i32_0 = arith.constant 0 : i32
    %c0_i32_1 = arith.constant 0 : i32
    return %c0_i32, %c0_i32_0 : i32, i32
  }
  func.func @transform_4(%arg0: i32) -> (i32, i32) {
    %c0_i32 = arith.constant 0 : i32
    %c0_i32_0 = arith.constant 0 : i32
    %c0_i32_1 = arith.constant 0 : i32
    return %c0_i32, %c0_i32_0 : i32, i32
  }
  func.func @transform_5(%arg0: i32) -> (i32, i32) {
    %c0_i32 = arith.constant 0 : i32
    %c0_i32_0 = arith.constant 0 : i32
    return %arg0, %c0_i32 : i32, i32
  }
}

</mosaic_0001>

<bundles_post_ra>
// kernel: tpu_custom_call.1
= control target key start
LH: loop header
LB: loop body
LE: loop exit
PB: predicated region body
PF: predicated region fallthrough
CT: control target
= control target key end

     0   :  { %10 = vsyncpa [#allocation3], 0  ;;  %s6929_s0 = inlined_call_operand.hbm [shape: bf16[8,6920], index: 0, kind: input, shape index: {}]   ;;  %s6930_s1 = inlined_call_operand.hbm [shape: bf16[6920,128], index: 1, kind: input, shape index: {}]   ;;  %s6931_s2 = inlined_call_operand.hbm [shape: f32[1,128], index: 2, kind: input, shape index: {}]   ;;  %s6932_s3 = inlined_call_operand.vmem [shape: f32[128,2], index: 3, kind: input, shape index: {}]   ;;  %s6933_s4 = inlined_call_operand.hbm [shape: f32[1,2], index: 4, kind: input, shape index: {}]   ;;  %s6934_s5 = inlined_call_operand.vmem [shape: f32[8,2], index: 5, kind: output, shape index: {}]  }
   0x1   :  { %11 = vsyncpa [#allocation5], 0  ;;  %s28_s20 = sshll.u32 %s6930_s1, 4  ;;  %s29_s20 = int_to_ptr.hbm [resolvable:$true] %s28_s20 }
   0x2   :  { %12 = vsyncpa [#allocation8], 0  ;;  %s6806_s21 = smov [#allocation4]   ;;  %s18_s25 = sshll.u32 %s6929_s0, 4  ;;  %s19_s25 = int_to_ptr.hbm [resolvable:$true] %s18_s25 }
   0x3   :  { %s30_s22 = sshll.u32 %s6806_s21, 4  ;;  %s6807_s26 = smov 64   ;;  %s31_s22 = int_to_ptr.vmem [resolvable:$true] %s30_s22 }
   0x4   :  { %s6808_s27 = smov 4   ;;  %s6809_s28 = smov [#allocation2]  }
   0x5   :  { %36 = dma.hbm_to_vmem [thread:$0]  %s29_s20, 55360, %s31_s22, [#allocation5], %s6807_s26, %s6807_s26, %s6808_s27  }
   0x6   :  { %s20_s29 = sshll.u32 %s6809_s28, 4  ;;  %s42_s7 = sshll.u32 %s6931_s2, 4  ;;  %s21_s29 = int_to_ptr.vmem [resolvable:$true] %s20_s29  ;;  %s43_s7 = int_to_ptr.hbm [resolvable:$true] %s42_s7 }
   0x7   :  { %23 = dma.hbm_to_vmem [thread:$0]  %s19_s25, 3520, %s21_s29, [#allocation3]  }
   0x8   :  { %s55_s9 = sshll.u32 %s6933_s4, 4  ;;  %s6810_s10 = smov [#allocation6]   ;;  %s56_s9 = int_to_ptr.hbm [resolvable:$true] %s55_s9 }
   0x9   :  { %s44_s11 = sshll.u32 %s6810_s10, 4  ;;  %s6811_s0 = smov [#allocation7]   ;;  %s45_s11 = int_to_ptr.vmem [resolvable:$true] %s44_s11 }
   0xa   :  { %47 = dma.hbm_to_vmem [thread:$0]  %s43_s7, 16, %s45_s11, [#allocation5]  }
   0xb   :  { %s57_s12 = sshll.u32 %s6811_s0, 4  ;;  %s58_s12 = int_to_ptr.vmem [resolvable:$true] %s57_s12 }
   0xc   :  { %60 = dma.hbm_to_vmem [thread:$0]  %s56_s9, 16, %s58_s12, [#allocation8]  }
   0xd   :  { %6800 = dma.done.wait [#allocation3], 3520  }
   0xe   :  { %6801 = vsyncadd [#allocation3], 4294963776 }
   0xf   :  { %6802 = dma.done.wait [#allocation5], 55376  }
  0x10   :  { %6803 = vsyncadd [#allocation5], 4294911920 }
  0x11   :  { %6804 = dma.done.wait [#allocation8], 16  }
  0x12   :  { %6805 = vsyncadd [#allocation8], 4294967280  ;;  %v6271_v0 = vld [vmem:[#allocation4 + $0x38] sm:$0xff]  ;;  %v6270_v4 = vld [vmem:[#allocation4 + $0x30] sm:$0xff]  ;;  %vm3766_vm0 = vcmask 1043456   ;;  %vm3762_vm1 = vcmask 64512  }
  0x13   :  { %v6279_v1 = vld [vmem:[#allocation4 + $0x78] sm:$0xff]  ;;  %3770 = vmatpush.bf16.msra.mxu0 %v6271_v0  ;;  %v6278_v5 = vld [vmem:[#allocation4 + $0x70] sm:$0xff]  ;;  %v6269_v8 = vld [vmem:[#allocation4 + $0x28] sm:$0xff]  ;;  %vm4526_vm2 = vcmask 15360  }
  0x14   :  { %v6287_v2 = vld [vmem:[#allocation4 + $0xb8] sm:$0xff]  ;;  %3783 = vmatpush.bf16.msra.mxu1 %v6279_v1  ;;  %v6286_v6 = vld [vmem:[#allocation4 + $0xb0] sm:$0xff]  ;;  %v6277_v9 = vld [vmem:[#allocation4 + $0x68] sm:$0xff] }
  0x15   :  { %v6295_v3 = vld [vmem:[#allocation4 + $0xf8] sm:$0xff]  ;;  %3796 = vmatpush.bf16.msra.mxu2 %v6287_v2  ;;  %v6294_v7 = vld [vmem:[#allocation4 + $0xf0] sm:$0xff]  ;;  %v6285_v10 = vld [vmem:[#allocation4 + $0xa8] sm:$0xff] }
  0x16   :  { %3809 = vmatpush.bf16.msra.mxu3 %v6295_v3  ;;  %v6293_v11 = vld [vmem:[#allocation4 + $0xe8] sm:$0xff]  ;;  %v6268_v12 = vld [vmem:[#allocation4 + $0x20] sm:$0xff]  ;;  %v6267_v16 = vld [vmem:[#allocation4 + $0x18] sm:$0xff] }
  0x17   :  { %3771 = vmatpush.bf16.msra.mxu0 %v6270_v4  ;;  %v6276_v13 = vld [vmem:[#allocation4 + $0x60] sm:$0xff]  ;;  %v6275_v17 = vld [vmem:[#allocation4 + $0x58] sm:$0xff]  ;;  %v6266_v20 = vld [vmem:[#allocation4 + $0x10] sm:$0xff] }
  0x18   :  { %3784 = vmatpush.bf16.msra.mxu1 %v6278_v5  ;;  %v6284_v14 = vld [vmem:[#allocation4 + $0xa0] sm:$0xff]  ;;  %v6283_v18 = vld [vmem:[#allocation4 + $0x98] sm:$0xff]  ;;  %v6274_v21 = vld [vmem:[#allocation4 + $0x50] sm:$0xff] }
  0x19   :  { %3797 = vmatpush.bf16.msra.mxu2 %v6286_v6  ;;  %v6292_v15 = vld [vmem:[#allocation4 + $0xe0] sm:$0xff]  ;;  %v6291_v19 = vld [vmem:[#allocation4 + $0xd8] sm:$0xff]  ;;  %v6282_v22 = vld [vmem:[#allocation4 + $0x90] sm:$0xff] }
  0x1a   :  { %3810 = vmatpush.bf16.msra.mxu3 %v6294_v7  ;;  %v6290_v23 = vld [vmem:[#allocation4 + $0xd0] sm:$0xff]  ;;  %v6265_v24 = vld [vmem:[#allocation4 + $0x8] sm:$0xff]  ;;  %v6264_v31 = vld [vmem:[#allocation4] sm:$0xff] }
  0x1b   :  { %3772 = vmatpush.bf16.msra.mxu0 %v6269_v8  ;;  %v6273_v25 = vld [vmem:[#allocation4 + $0x48] sm:$0xff]  ;;  %v6272_v32 = vld [vmem:[#allocation4 + $0x40] sm:$0xff]  ;;  %v6303_v35 = vld [vmem:[#allocation4 + $0x138] sm:$0xff] }
  0x1c   :  { %3785 = vmatpush.bf16.msra.mxu1 %v6277_v9  ;;  %v78_v26 = vld [vmem:[#allocation2] sm:$0xff]  ;;  %v79_v29 = vld [vmem:[#allocation2 + $0x8] sm:$0xff]  ;;  %v6311_v37 = vld [vmem:[#allocation4 + $0x178] sm:$0xff] }
  0x1d   :  { %3798 = vmatpush.bf16.msra.mxu2 %v6285_v10  ;;  %v6281_v27 = vld [vmem:[#allocation4 + $0x88] sm:$0xff]  ;;  %v1003_v30 = vunpack.c.l.b16 %v78_v26  ;;  %v1005_v33 = vunpack.c.l.b16 %v79_v29  ;;  %v6280_v34 = vld [vmem:[#allocation4 + $0x80] sm:$0xff]  ;;  %v1004_v36 = vunpack.c.h.b16 %v78_v26  ;;  %v6319_v38 = vld [vmem:[#allocation4 + $0x1b8] sm:$0xff]  ;;  %v1006_v41 = vunpack.c.h.b16 %v79_v29 }
  0x1e   :  { %3811 = vmatpush.bf16.msra.mxu3 %v6293_v11  ;;  %v6289_v28 = vld [vmem:[#allocation4 + $0xc8] sm:$0xff]  ;;  %v6288_v39 = vld [vmem:[#allocation4 + $0xc0] sm:$0xff]  ;;  %v6327_v42 = vld [vmem:[#allocation4 + $0x1f8] sm:$0xff] }
  0x1f   :  { %3773 = vmatpush.bf16.msra.mxu0 %v6268_v12  ;;  %v1058_v40 = vpack.c.b16 %v1003_v30, %v1003_v30  ;;  %v1060_v43 = vpack.c.b16 %v1005_v33, %v1005_v33  ;;  %v6302_v44 = vld [vmem:[#allocation4 + $0x130] sm:$0xff]  ;;  %v1059_v45 = vpack.c.b16 %v1004_v36, %v1004_v36  ;;  %v1061_v48 = vpack.c.b16 %v1006_v41, %v1006_v41  ;;  %v6301_v50 = vld [vmem:[#allocation4 + $0x128] sm:$0xff]  ;;  %v6300_v54 = vld [vmem:[#allocation4 + $0x120] sm:$0xff] }
  0x20   :  { %3786 = vmatpush.bf16.msra.mxu1 %v6276_v13  ;;  %v6310_v46 = vld [vmem:[#allocation4 + $0x170] sm:$0xff]  ;;  %v6309_v51 = vld [vmem:[#allocation4 + $0x168] sm:$0xff]  ;;  %v6308_v55 = vld [vmem:[#allocation4 + $0x160] sm:$0xff] }
  0x21   :  { %3799 = vmatpush.bf16.msra.mxu2 %v6284_v14  ;;  %v6318_v47 = vld [vmem:[#allocation4 + $0x1b0] sm:$0xff]  ;;  %v6317_v52 = vld [vmem:[#allocation4 + $0x1a8] sm:$0xff]  ;;  %v6316_v56 = vld [vmem:[#allocation4 + $0x1a0] sm:$0xff] }
  0x22   :  { %3812 = vmatpush.bf16.msra.mxu3 %v6292_v15  ;;  %v6326_v49 = vld [vmem:[#allocation4 + $0x1f0] sm:$0xff]  ;;  %v6325_v53 = vld [vmem:[#allocation4 + $0x1e8] sm:$0xff]  ;;  %v6324_v57 = vld [vmem:[#allocation4 + $0x1e0] sm:$0xff] }
  0x23   :  { %3774 = vmatpush.bf16.msra.mxu0 %v6267_v16  ;;  %v6299_v58 = vld [vmem:[#allocation4 + $0x118] sm:$0xff]  ;;  %v6298_v62 = vld [vmem:[#allocation4 + $0x110] sm:$0xff]  ;;  %v6297_v2 = vld [vmem:[#allocation4 + $0x108] sm:$0xff] }
  0x24   :  { %3787 = vmatpush.bf16.msra.mxu1 %v6275_v17  ;;  %v6307_v59 = vld [vmem:[#allocation4 + $0x158] sm:$0xff]  ;;  %v6306_v63 = vld [vmem:[#allocation4 + $0x150] sm:$0xff]  ;;  %v6305_v3 = vld [vmem:[#allocation4 + $0x148] sm:$0xff] }
  0x25   :  { %3800 = vmatpush.bf16.msra.mxu2 %v6283_v18  ;;  %v6315_v60 = vld [vmem:[#allocation4 + $0x198] sm:$0xff]  ;;  %v6314_v0 = vld [vmem:[#allocation4 + $0x190] sm:$0xff]  ;;  %v6313_v4 = vld [vmem:[#allocation4 + $0x188] sm:$0xff] }
  0x26   :  { %3813 = vmatpush.bf16.msra.mxu3 %v6291_v19  ;;  %v6323_v61 = vld [vmem:[#allocation4 + $0x1d8] sm:$0xff]  ;;  %v6322_v1 = vld [vmem:[#allocation4 + $0x1d0] sm:$0xff]  ;;  %v6321_v7 = vld [vmem:[#allocation4 + $0x1c8] sm:$0xff] }
  0x27   :  { %3775 = vmatpush.bf16.msra.mxu0 %v6266_v20  ;;  %v81_v5 = vld [vmem:[#allocation2 + $0x18] sm:$0xff]  ;;  %v80_v6 = vld [vmem:[#allocation2 + $0x10] sm:$0xff]  ;;  %v6341_v29 = vld [vmem:[#allocation4 + $0x268] sm:$0xff] }
  0x28   :  { %3788 = vmatpush.bf16.msra.mxu1 %v6274_v21  ;;  %v6296_v8 = vld [vmem:[#allocation4 + $0x100] sm:$0xff]  ;;  %v1009_v9 = vunpack.c.l.b16 %v81_v5  ;;  %v1007_v12 = vunpack.c.l.b16 %v80_v6  ;;  %v1008_v13 = vunpack.c.h.b16 %v80_v6  ;;  %v6335_v14 = vld [vmem:[#allocation4 + $0x238] sm:$0xff]  ;;  %v1010_v18 = vunpack.c.h.b16 %v81_v5  ;;  %v6349_v30 = vld [vmem:[#allocation4 + $0x2a8] sm:$0xff] }
  0x29   :  { %3801 = vmatpush.bf16.msra.mxu2 %v6282_v22  ;;  %v6304_v10 = vld [vmem:[#allocation4 + $0x140] sm:$0xff]  ;;  %v6343_v15 = vld [vmem:[#allocation4 + $0x278] sm:$0xff]  ;;  %v6338_v41 = vld [vmem:[#allocation4 + $0x250] sm:$0xff] }
  0x2a   :  { %3814 = vmatpush.bf16.msra.mxu3 %v6290_v23  ;;  %v6312_v11 = vld [vmem:[#allocation4 + $0x180] sm:$0xff]  ;;  %v6351_v16 = vld [vmem:[#allocation4 + $0x2b8] sm:$0xff]  ;;  %v1064_v20 = vpack.c.b16 %v1009_v9, %v1009_v9  ;;  %v1062_v21 = vpack.c.b16 %v1007_v12, %v1007_v12  ;;  %v1063_v22 = vpack.c.b16 %v1008_v13, %v1008_v13  ;;  %v6334_v23 = vld [vmem:[#allocation4 + $0x230] sm:$0xff]  ;;  %v1065_v26 = vpack.c.b16 %v1010_v18, %v1010_v18 }
  0x2b   :  { %3776 = vmatpush.bf16.msra.mxu0 %v6265_v24  ;;  %v6320_v17 = vld [vmem:[#allocation4 + $0x1c0] sm:$0xff]  ;;  %v6359_v19 = vld [vmem:[#allocation4 + $0x2f8] sm:$0xff]  ;;  %v6342_v24 = vld [vmem:[#allocation4 + $0x270] sm:$0xff] }
  0x2c   :  { %3789 = vmatpush.bf16.msra.mxu1 %v6273_v25  ;;  %v6350_v25 = vld [vmem:[#allocation4 + $0x2b0] sm:$0xff]  ;;  %v6340_v33 = vld [vmem:[#allocation4 + $0x260] sm:$0xff]  ;;  %v6331_v36 = vld [vmem:[#allocation4 + $0x218] sm:$0xff] }
  0x2d   :  { %3802 = vmatpush.bf16.msra.mxu2 %v6281_v27  ;;  %v6358_v27 = vld [vmem:[#allocation4 + $0x2f0] sm:$0xff]  ;;  %v6365_v6 = vld [vmem:[#allocation4 + $0x328] sm:$0xff]  ;;  %v6380_v12 = vld [vmem:[#allocation4 + $0x3a0] sm:$0xff] }
  0x2e   :  { %3815 = vmatpush.bf16.msra.mxu3 %v6289_v28  ;;  %v6333_v28 = vld [vmem:[#allocation4 + $0x228] sm:$0xff]  ;;  %v6390_v5 = vld [vmem:[#allocation4 + $0x3f0] sm:$0xff]  ;;  %v6388_v13 = vld [vmem:[#allocation4 + $0x3e0] sm:$0xff] }
  0x2f   :  { %3777 = vmatpush.bf16.msra.mxu0 %v6264_v31  ;;  %v6357_v31 = vld [vmem:[#allocation4 + $0x2e8] sm:$0xff]  ;;  %v6362_v18 = vld [vmem:[#allocation4 + $0x310] sm:$0xff] }
  0x30   :  { %3790 = vmatpush.bf16.msra.mxu1 %v6272_v32  ;;  %v6332_v32 = vld [vmem:[#allocation4 + $0x220] sm:$0xff]  ;;  %v6389_v9 = vld [vmem:[#allocation4 + $0x3e8] sm:$0xff] }
  0x31   :  { %3803 = vmatpush.bf16.msra.mxu2 %v6280_v34  ;;  %v6348_v34 = vld [vmem:[#allocation4 + $0x2a0] sm:$0xff] }
  0x32   :  { %3816 = vmatpush.bf16.msra.mxu3 %v6288_v39  ;;  %3778 = vmatmul.bf16.vlgmr.msra.gmra.mxu0 %v1058_v40  ;;  %v6355_v39 = vld [vmem:[#allocation4 + $0x2d8] sm:$0xff]  ;;  %v6330_v40 = vld [vmem:[#allocation4 + $0x210] sm:$0xff] }
  0x33   :  { %3822 = vmatpush.bf16.msrb.mxu0 %v6303_v35  ;;  %3791 = vmatmul.bf16.vlgmr.msra.gmra.mxu1 %v1059_v45  ;;  %v6356_v35 = vld [vmem:[#allocation4 + $0x2e0] sm:$0xff]  ;;  %v6337_v45 = vld [vmem:[#allocation4 + $0x248] sm:$0xff] }
  0x34   :  { %3835 = vmatpush.bf16.msrb.mxu1 %v6311_v37  ;;  %3804 = vmatmul.bf16.vlgmr.msra.gmra.mxu2 %v1060_v43  ;;  %v6339_v37 = vld [vmem:[#allocation4 + $0x258] sm:$0xff]  ;;  %v6354_v43 = vld [vmem:[#allocation4 + $0x2d0] sm:$0xff] }
  0x35   :  { %3848 = vmatpush.bf16.msrb.mxu2 %v6319_v38  ;;  %3817 = vmatmul.bf16.vlgmr.msra.gmra.mxu3 %v1061_v48  ;;  %v6347_v38 = vld [vmem:[#allocation4 + $0x298] sm:$0xff]  ;;  %v83_v48 = vld [vmem:[#allocation2 + $0x28] sm:$0xff] }
  0x36   :  { %3861 = vmatpush.bf16.msrb.mxu3 %v6327_v42  ;;  %v6346_v42 = vld [vmem:[#allocation4 + $0x290] sm:$0xff] }
  0x37   :  { %3823 = vmatpush.bf16.msrb.mxu0 %v6302_v44  ;;  %v6329_v44 = vld [vmem:[#allocation4 + $0x208] sm:$0xff] }
  0x38   :  { %3836 = vmatpush.bf16.msrb.mxu1 %v6310_v46  ;;  %v82_v46 = vld [vmem:[#allocation2 + $0x20] sm:$0xff] }
  0x39   :  { %3849 = vmatpush.bf16.msrb.mxu2 %v6318_v47  ;;  %v6345_v47 = vld [vmem:[#allocation4 + $0x288] sm:$0xff] }
  0x3a   :  { %3862 = vmatpush.bf16.msrb.mxu3 %v6326_v49  ;;  %v6353_v49 = vld [vmem:[#allocation4 + $0x2c8] sm:$0xff] }
  0x3b   :  { %3824 = vmatpush.bf16.msrb.mxu0 %v6301_v50  ;;  %v1011_v50 = vunpack.c.l.b16 %v82_v46 }
  0x3c   :  { %3837 = vmatpush.bf16.msrb.mxu1 %v6309_v51  ;;  %v6328_v51 = vld [vmem:[#allocation4 + $0x200] sm:$0xff] }
  0x3d   :  { %3850 = vmatpush.bf16.msrb.mxu2 %v6317_v52  ;;  %v6336_v52 = vld [vmem:[#allocation4 + $0x240] sm:$0xff] }
  0x3e   :  { %3863 = vmatpush.bf16.msrb.mxu3 %v6325_v53  ;;  %v1013_v53 = vunpack.c.l.b16 %v83_v48 }
  0x3f   :  { %3825 = vmatpush.bf16.msrb.mxu0 %v6300_v54  ;;  %v6344_v54 = vld [vmem:[#allocation4 + $0x280] sm:$0xff] }
  0x40   :  { %3838 = vmatpush.bf16.msrb.mxu1 %v6308_v55  ;;  %v6367_v55 = vld [vmem:[#allocation4 + $0x338] sm:$0xff] }
  0x41   :  { %3851 = vmatpush.bf16.msrb.mxu2 %v6316_v56  ;;  %v1012_v56 = vunpack.c.h.b16 %v82_v46  ;;  %v6414_v46 = vld [vmem:[#allocation4 + $0x4b0] sm:$0xff] }
  0x42   :  { %3864 = vmatpush.bf16.msrb.mxu3 %v6324_v57  ;;  %v6375_v57 = vld [vmem:[#allocation4 + $0x378] sm:$0xff] }
  0x43   :  { %3826 = vmatpush.bf16.msrb.mxu0 %v6299_v58  ;;  %v6383_v58 = vld [vmem:[#allocation4 + $0x3b8] sm:$0xff] }
  0x44   :  { %3839 = vmatpush.bf16.msrb.mxu1 %v6307_v59  ;;  %v1014_v59 = vunpack.c.h.b16 %v83_v48  ;;  %v6397_v48 = vld [vmem:[#allocation4 + $0x428] sm:$0xff] }
  0x45   :  { %3852 = vmatpush.bf16.msrb.mxu2 %v6315_v60  ;;  %v6352_v60 = vld [vmem:[#allocation4 + $0x2c0] sm:$0xff] }
  0x46   :  { %3865 = vmatpush.bf16.msrb.mxu3 %v6323_v61  ;;  %v1066_v61 = vpack.c.b16 %v1011_v50, %v1011_v50  ;;  %v6413_v50 = vld [vmem:[#allocation4 + $0x4a8] sm:$0xff] }
  0x47   :  { %3827 = vmatpush.bf16.msrb.mxu0 %v6298_v62  ;;  %v1068_v62 = vpack.c.b16 %v1013_v53, %v1013_v53  ;;  %v6404_v53 = vld [vmem:[#allocation4 + $0x460] sm:$0xff] }
  0x48   :  { %3840 = vmatpush.bf16.msrb.mxu1 %v6306_v63  ;;  %v6391_v63 = vld [vmem:[#allocation4 + $0x3f8] sm:$0xff] }
  0x49   :  { %3853 = vmatpush.bf16.msrb.mxu2 %v6314_v0  ;;  %v1067_v0 = vpack.c.b16 %v1012_v56, %v1012_v56  ;;  %v6395_v56 = vld [vmem:[#allocation4 + $0x418] sm:$0xff] }
  0x4a   :  { %3866 = vmatpush.bf16.msrb.mxu3 %v6322_v1  ;;  %v6366_v1 = vld [vmem:[#allocation4 + $0x330] sm:$0xff] }
  0x4b   :  { %3828 = vmatpush.bf16.msrb.mxu0 %v6297_v2  ;;  %v1069_v2 = vpack.c.b16 %v1014_v59, %v1014_v59  ;;  %v6419_v59 = vld [vmem:[#allocation4 + $0x4d8] sm:$0xff] }
  0x4c   :  { %3841 = vmatpush.bf16.msrb.mxu1 %v6305_v3  ;;  %v6374_v3 = vld [vmem:[#allocation4 + $0x370] sm:$0xff] }
  0x4d   :  { %3854 = vmatpush.bf16.msrb.mxu2 %v6313_v4  ;;  %v6382_v4 = vld [vmem:[#allocation4 + $0x3b0] sm:$0xff] }
  0x4e   :  { %3867 = vmatpush.bf16.msrb.mxu3 %v6321_v7  ;;  %v6373_v7 = vld [vmem:[#allocation4 + $0x368] sm:$0xff] }
  0x4f   :  { %3829 = vmatpush.bf16.msrb.mxu0 %v6296_v8  ;;  %v6381_v8 = vld [vmem:[#allocation4 + $0x3a8] sm:$0xff] }
  0x50   :  { %3842 = vmatpush.bf16.msrb.mxu1 %v6304_v10  ;;  %v6364_v10 = vld [vmem:[#allocation4 + $0x320] sm:$0xff] }
  0x51   :  { %3855 = vmatpush.bf16.msrb.mxu2 %v6312_v11  ;;  %v6372_v11 = vld [vmem:[#allocation4 + $0x360] sm:$0xff] }
  0x52   :  { %3868 = vmatpush.bf16.msrb.mxu3 %v6320_v17  ;;  %3830 = vmatmul.bf16.vlgmr.msrb.gmra.mxu0 %v1062_v21  ;;  %v6387_v17 = vld [vmem:[#allocation4 + $0x3d8] sm:$0xff]  ;;  %v6386_v21 = vld [vmem:[#allocation4 + $0x3d0] sm:$0xff] }
  0x53   :  { %3874 = vmatpush.bf16.msra.mxu0 %v6335_v14  ;;  %3843 = vmatmul.bf16.vlgmr.msrb.gmra.mxu1 %v1063_v22  ;;  %v6363_v14 = vld [vmem:[#allocation4 + $0x318] sm:$0xff]  ;;  %v6361_v22 = vld [vmem:[#allocation4 + $0x308] sm:$0xff] }
  0x54   :  { %3887 = vmatpush.bf16.msra.mxu1 %v6343_v15  ;;  %3856 = vmatmul.bf16.vlgmr.msrb.gmra.mxu2 %v1064_v20  ;;  %v6371_v15 = vld [vmem:[#allocation4 + $0x358] sm:$0xff]  ;;  %v6378_v20 = vld [vmem:[#allocation4 + $0x390] sm:$0xff] }
  0x55   :  { %3900 = vmatpush.bf16.msra.mxu2 %v6351_v16  ;;  %3869 = vmatmul.bf16.vlgmr.msrb.gmra.mxu3 %v1065_v26  ;;  %v6379_v16 = vld [vmem:[#allocation4 + $0x398] sm:$0xff] }
  0x56   :  { %3913 = vmatpush.bf16.msra.mxu3 %v6359_v19  ;;  %v6370_v19 = vld [vmem:[#allocation4 + $0x350] sm:$0xff]  ;;  %v85_v26 = vld [vmem:[#allocation2 + $0x38] sm:$0xff] }
  0x57   :  { %3875 = vmatpush.bf16.msra.mxu0 %v6334_v23  ;;  %v6369_v23 = vld [vmem:[#allocation4 + $0x348] sm:$0xff] }
  0x58   :  { %3888 = vmatpush.bf16.msra.mxu1 %v6342_v24  ;;  %v84_v24 = vld [vmem:[#allocation2 + $0x30] sm:$0xff] }
  0x59   :  { %3901 = vmatpush.bf16.msra.mxu2 %v6350_v25  ;;  %v6377_v25 = vld [vmem:[#allocation4 + $0x388] sm:$0xff] }
  0x5a   :  { %3914 = vmatpush.bf16.msra.mxu3 %v6358_v27  ;;  %v6385_v27 = vld [vmem:[#allocation4 + $0x3c8] sm:$0xff] }
  0x5b   :  { %3876 = vmatpush.bf16.msra.mxu0 %v6333_v28  ;;  %v6360_v28 = vld [vmem:[#allocation4 + $0x300] sm:$0xff] }
  0x5c   :  { %3889 = vmatpush.bf16.msra.mxu1 %v6341_v29  ;;  %v1015_v29 = vunpack.c.l.b16 %v84_v24 }
  0x5d   :  { %3902 = vmatpush.bf16.msra.mxu2 %v6349_v30  ;;  %v6368_v30 = vld [vmem:[#allocation4 + $0x340] sm:$0xff] }
  0x5e   :  { %3915 = vmatpush.bf16.msra.mxu3 %v6357_v31  ;;  %v6399_v31 = vld [vmem:[#allocation4 + $0x438] sm:$0xff] }
  0x5f   :  { %3877 = vmatpush.bf16.msra.mxu0 %v6332_v32  ;;  %v1017_v32 = vunpack.c.l.b16 %v85_v26 }
  0x60   :  { %3890 = vmatpush.bf16.msra.mxu1 %v6340_v33  ;;  %v1016_v33 = vunpack.c.h.b16 %v84_v24  ;;  %v6446_v24 = vld [vmem:[#allocation4 + $0x5b0] sm:$0xff] }
  0x61   :  { %3903 = vmatpush.bf16.msra.mxu2 %v6348_v34  ;;  %v6376_v34 = vld [vmem:[#allocation4 + $0x380] sm:$0xff] }
  0x62   :  { %3916 = vmatpush.bf16.msra.mxu3 %v6356_v35  ;;  %v6407_v35 = vld [vmem:[#allocation4 + $0x478] sm:$0xff] }
  0x63   :  { %3878 = vmatpush.bf16.msra.mxu0 %v6331_v36  ;;  %v1018_v36 = vunpack.c.h.b16 %v85_v26  ;;  %v6429_v26 = vld [vmem:[#allocation4 + $0x528] sm:$0xff] }
  0x64   :  { %3891 = vmatpush.bf16.msra.mxu1 %v6339_v37  ;;  %v6415_v37 = vld [vmem:[#allocation4 + $0x4b8] sm:$0xff] }
  0x65   :  { %3904 = vmatpush.bf16.msra.mxu2 %v6347_v38  ;;  %v6384_v38 = vld [vmem:[#allocation4 + $0x3c0] sm:$0xff] }
  0x66   :  { %3917 = vmatpush.bf16.msra.mxu3 %v6355_v39  ;;  %v1070_v39 = vpack.c.b16 %v1015_v29, %v1015_v29  ;;  %v6702_v29 = vld [vmem:[#allocation6] ss:$0 sm:$0xff] }
  0x67   :  { %3879 = vmatpush.bf16.msra.mxu0 %v6330_v40  ;;  %v6423_v40 = vld [vmem:[#allocation4 + $0x4f8] sm:$0xff] }
  0x68   :  { %3892 = vmatpush.bf16.msra.mxu1 %v6338_v41  ;;  %v1072_v41 = vpack.c.b16 %v1017_v32, %v1017_v32 }
  0x69   :  { %3905 = vmatpush.bf16.msra.mxu2 %v6346_v42  ;;  %v1071_v42 = vpack.c.b16 %v1016_v33, %v1016_v33  ;;  %v6436_v33 = vld [vmem:[#allocation4 + $0x560] sm:$0xff] }
  0x6a   :  { %3918 = vmatpush.bf16.msra.mxu3 %v6354_v43  ;;  %v1073_v43 = vpack.c.b16 %v1018_v36, %v1018_v36 }
  0x6b   :  { %3880 = vmatpush.bf16.msra.mxu0 %v6329_v44  ;;  %v6398_v44 = vld [vmem:[#allocation4 + $0x430] sm:$0xff] }
  0x6c   :  { %3893 = vmatpush.bf16.msra.mxu1 %v6337_v45  ;;  %v6406_v45 = vld [vmem:[#allocation4 + $0x470] sm:$0xff] }
  0x6d   :  { %3906 = vmatpush.bf16.msra.mxu2 %v6345_v47  ;;  %v6422_v47 = vld [vmem:[#allocation4 + $0x4f0] sm:$0xff] }
  0x6e   :  { %3919 = vmatpush.bf16.msra.mxu3 %v6353_v49  ;;  %v6405_v49 = vld [vmem:[#allocation4 + $0x468] sm:$0xff] }
  0x6f   :  { %3881 = vmatpush.bf16.msra.mxu0 %v6328_v51  ;;  %v6421_v51 = vld [vmem:[#allocation4 + $0x4e8] sm:$0xff] }
  0x70   :  { %3894 = vmatpush.bf16.msra.mxu1 %v6336_v52  ;;  %v6396_v52 = vld [vmem:[#allocation4 + $0x420] sm:$0xff] }
  0x71   :  { %3907 = vmatpush.bf16.msra.mxu2 %v6344_v54  ;;  %v6412_v54 = vld [vmem:[#allocation4 + $0x4a0] sm:$0xff] }
  0x72   :  { %3920 = vmatpush.bf16.msra.mxu3 %v6352_v60  ;;  %3882 = vmatmul.bf16.vlgmr.msra.gmra.mxu0 %v1066_v61  ;;  %v6394_v60 = vld [vmem:[#allocation4 + $0x410] sm:$0xff] }
  0x73   :  { %3926 = vmatpush.bf16.msrb.mxu0 %v6367_v55  ;;  %3895 = vmatmul.bf16.vlgmr.msra.gmra.mxu1 %v1067_v0  ;;  %v6420_v55 = vld [vmem:[#allocation4 + $0x4e0] sm:$0xff]  ;;  %v6402_v61 = vld [vmem:[#allocation4 + $0x450] sm:$0xff]  ;;  %v6393_v0 = vld [vmem:[#allocation4 + $0x408] sm:$0xff] }
  0x74   :  { %3939 = vmatpush.bf16.msrb.mxu1 %v6375_v57  ;;  %3908 = vmatmul.bf16.vlgmr.msra.gmra.mxu2 %v1068_v62  ;;  %v6403_v57 = vld [vmem:[#allocation4 + $0x458] sm:$0xff]  ;;  %v6410_v62 = vld [vmem:[#allocation4 + $0x490] sm:$0xff] }
  0x75   :  { %3952 = vmatpush.bf16.msrb.mxu2 %v6383_v58  ;;  %3921 = vmatmul.bf16.vlgmr.msra.gmra.mxu3 %v1069_v2  ;;  %v6411_v58 = vld [vmem:[#allocation4 + $0x498] sm:$0xff]  ;;  %v6409_v2 = vld [vmem:[#allocation4 + $0x488] sm:$0xff] }
  0x76   :  { %3965 = vmatpush.bf16.msrb.mxu3 %v6391_v63  ;;  %v6418_v63 = vld [vmem:[#allocation4 + $0x4d0] sm:$0xff] }
  0x77   :  { %3927 = vmatpush.bf16.msrb.mxu0 %v6366_v1  ;;  %v6401_v1 = vld [vmem:[#allocation4 + $0x448] sm:$0xff] }
  0x78   :  { %3940 = vmatpush.bf16.msrb.mxu1 %v6374_v3  ;;  %v86_v3 = vld [vmem:[#allocation2 + $0x40] sm:$0xff] }
  0x79   :  { %3953 = vmatpush.bf16.msrb.mxu2 %v6382_v4  ;;  %v87_v4 = vld [vmem:[#allocation2 + $0x48] sm:$0xff] }
  0x7a   :  { %3966 = vmatpush.bf16.msrb.mxu3 %v6390_v5  ;;  %v6417_v5 = vld [vmem:[#allocation4 + $0x4c8] sm:$0xff] }
  0x7b   :  { %3928 = vmatpush.bf16.msrb.mxu0 %v6365_v6  ;;  %v6392_v6 = vld [vmem:[#allocation4 + $0x400] sm:$0xff] }
  0x7c   :  { %3941 = vmatpush.bf16.msrb.mxu1 %v6373_v7  ;;  %v1019_v7 = vunpack.c.l.b16 %v86_v3 }
  0x7d   :  { %3954 = vmatpush.bf16.msrb.mxu2 %v6381_v8  ;;  %v1021_v8 = vunpack.c.l.b16 %v87_v4 }
  0x7e   :  { %3967 = vmatpush.bf16.msrb.mxu3 %v6389_v9  ;;  %v6400_v9 = vld [vmem:[#allocation4 + $0x440] sm:$0xff] }
  0x7f   :  { %3929 = vmatpush.bf16.msrb.mxu0 %v6364_v10  ;;  %v6408_v10 = vld [vmem:[#allocation4 + $0x480] sm:$0xff] }
  0x80   :  { %3942 = vmatpush.bf16.msrb.mxu1 %v6372_v11  ;;  %v1020_v11 = vunpack.c.h.b16 %v86_v3  ;;  %v6471_v3 = vld [vmem:[#allocation4 + $0x678] sm:$0xff] }
  0x81   :  { %3955 = vmatpush.bf16.msrb.mxu2 %v6380_v12  ;;  %v6431_v12 = vld [vmem:[#allocation4 + $0x538] sm:$0xff] }
  0x82   :  { %3968 = vmatpush.bf16.msrb.mxu3 %v6388_v13  ;;  %v6439_v13 = vld [vmem:[#allocation4 + $0x578] sm:$0xff] }
  0x83   :  { %3930 = vmatpush.bf16.msrb.mxu0 %v6363_v14  ;;  %v1022_v14 = vunpack.c.h.b16 %v87_v4 }
  0x84   :  { %3943 = vmatpush.bf16.msrb.mxu1 %v6371_v15  ;;  %v6447_v15 = vld [vmem:[#allocation4 + $0x5b8] sm:$0xff] }
  0x85   :  { %3956 = vmatpush.bf16.msrb.mxu2 %v6379_v16  ;;  %v6416_v16 = vld [vmem:[#allocation4 + $0x4c0] sm:$0xff] }
  0x86   :  { %3969 = vmatpush.bf16.msrb.mxu3 %v6387_v17  ;;  %v1074_v17 = vpack.c.b16 %v1019_v7, %v1019_v7  ;;  %v6448_v7 = vld [vmem:[#allocation4 + $0x5c0] sm:$0xff] }
  0x87   :  { %3931 = vmatpush.bf16.msrb.mxu0 %v6362_v18  ;;  %v1076_v18 = vpack.c.b16 %v1021_v8, %v1021_v8 }
  0x88   :  { %3944 = vmatpush.bf16.msrb.mxu1 %v6370_v19  ;;  %v6455_v19 = vld [vmem:[#allocation4 + $0x5f8] sm:$0xff] }
  0x89   :  { %3957 = vmatpush.bf16.msrb.mxu2 %v6378_v20  ;;  %v1075_v20 = vpack.c.b16 %v1020_v11, %v1020_v11 }
  0x8a   :  { %3970 = vmatpush.bf16.msrb.mxu3 %v6386_v21  ;;  %v1077_v21 = vpack.c.b16 %v1022_v14, %v1022_v14  ;;  %v6470_v14 = vld [vmem:[#allocation4 + $0x670] sm:$0xff] }
  0x8b   :  { %3932 = vmatpush.bf16.msrb.mxu0 %v6361_v22  ;;  %v6430_v22 = vld [vmem:[#allocation4 + $0x530] sm:$0xff] }
  0x8c   :  { %3945 = vmatpush.bf16.msrb.mxu1 %v6369_v23  ;;  %v6438_v23 = vld [vmem:[#allocation4 + $0x570] sm:$0xff] }
  0x8d   :  { %3958 = vmatpush.bf16.msrb.mxu2 %v6377_v25  ;;  %v6454_v25 = vld [vmem:[#allocation4 + $0x5f0] sm:$0xff] }
  0x8e   :  { %3971 = vmatpush.bf16.msrb.mxu3 %v6385_v27  ;;  %v6437_v27 = vld [vmem:[#allocation4 + $0x568] sm:$0xff] }
  0x8f   :  { %3933 = vmatpush.bf16.msrb.mxu0 %v6360_v28  ;;  %v6445_v28 = vld [vmem:[#allocation4 + $0x5a8] sm:$0xff] }
  0x90   :  { %3946 = vmatpush.bf16.msrb.mxu1 %v6368_v30  ;;  %v6453_v30 = vld [vmem:[#allocation4 + $0x5e8] sm:$0xff] }
  0x91   :  { %3959 = vmatpush.bf16.msrb.mxu2 %v6376_v34  ;;  %v6444_v34 = vld [vmem:[#allocation4 + $0x5a0] sm:$0xff] }
  0x92   :  { %3972 = vmatpush.bf16.msrb.mxu3 %v6384_v38  ;;  %3934 = vmatmul.bf16.vlgmr.msrb.gmra.mxu0 %v1070_v39  ;;  %v6427_v39 = vld [vmem:[#allocation4 + $0x518] sm:$0xff] }
  0x93   :  { %3978 = vmatpush.bf16.msra.mxu0 %v6399_v31  ;;  %3947 = vmatmul.bf16.vlgmr.msrb.gmra.mxu1 %v1071_v42  ;;  %v6428_v31 = vld [vmem:[#allocation4 + $0x520] sm:$0xff]  ;;  %v6451_v42 = vld [vmem:[#allocation4 + $0x5d8] sm:$0xff] }
  0x94   :  { %3991 = vmatpush.bf16.msra.mxu1 %v6407_v35  ;;  %3960 = vmatmul.bf16.vlgmr.msrb.gmra.mxu2 %v1072_v41  ;;  %v6443_v41 = vld [vmem:[#allocation4 + $0x598] sm:$0xff] }
  0x95   :  { %4004 = vmatpush.bf16.msra.mxu2 %v6415_v37  ;;  %3973 = vmatmul.bf16.vlgmr.msrb.gmra.mxu3 %v1073_v43  ;;  %v6452_v37 = vld [vmem:[#allocation4 + $0x5e0] sm:$0xff] }
  0x96   :  { %4017 = vmatpush.bf16.msra.mxu3 %v6423_v40  ;;  %v6435_v40 = vld [vmem:[#allocation4 + $0x558] sm:$0xff] }
  0x97   :  { %3979 = vmatpush.bf16.msra.mxu0 %v6398_v44  ;;  %v6426_v44 = vld [vmem:[#allocation4 + $0x510] sm:$0xff] }
  0x98   :  { %3992 = vmatpush.bf16.msra.mxu1 %v6406_v45 }
  0x99   :  { %4005 = vmatpush.bf16.msra.mxu2 %v6414_v46 }
  0x9a   :  { %4018 = vmatpush.bf16.msra.mxu3 %v6422_v47  ;;  %v6434_v47 = vld [vmem:[#allocation4 + $0x550] sm:$0xff] }
  0x9b   :  { %3980 = vmatpush.bf16.msra.mxu0 %v6397_v48  ;;  %v6442_v48 = vld [vmem:[#allocation4 + $0x590] sm:$0xff] }
  0x9c   :  { %3993 = vmatpush.bf16.msra.mxu1 %v6405_v49 }
  0x9d   :  { %4006 = vmatpush.bf16.msra.mxu2 %v6413_v50 }
  0x9e   :  { %4019 = vmatpush.bf16.msra.mxu3 %v6421_v51  ;;  %v6450_v51 = vld [vmem:[#allocation4 + $0x5d0] sm:$0xff] }
  0x9f   :  { %3981 = vmatpush.bf16.msra.mxu0 %v6396_v52 }
  0xa0   :  { %3994 = vmatpush.bf16.msra.mxu1 %v6404_v53  ;;  %v6425_v53 = vld [vmem:[#allocation4 + $0x508] sm:$0xff] }
  0xa1   :  { %4007 = vmatpush.bf16.msra.mxu2 %v6412_v54  ;;  %v6433_v54 = vld [vmem:[#allocation4 + $0x548] sm:$0xff] }
  0xa2   :  { %4020 = vmatpush.bf16.msra.mxu3 %v6420_v55  ;;  %v6441_v55 = vld [vmem:[#allocation4 + $0x588] sm:$0xff] }
  0xa3   :  { %3982 = vmatpush.bf16.msra.mxu0 %v6395_v56  ;;  %v88_v56 = vld [vmem:[#allocation2 + $0x50] sm:$0xff] }
  0xa4   :  { %3995 = vmatpush.bf16.msra.mxu1 %v6403_v57  ;;  %v89_v57 = vld [vmem:[#allocation2 + $0x58] sm:$0xff] }
  0xa5   :  { %4008 = vmatpush.bf16.msra.mxu2 %v6411_v58  ;;  %v6449_v58 = vld [vmem:[#allocation4 + $0x5c8] sm:$0xff]  ;;  %v1026_v4 = vunpack.c.h.b16 %v89_v57 }
  0xa6   :  { %4021 = vmatpush.bf16.msra.mxu3 %v6419_v59 }
  0xa7   :  { %3983 = vmatpush.bf16.msra.mxu0 %v6394_v60  ;;  %v6424_v60 = vld [vmem:[#allocation4 + $0x500] sm:$0xff] }
  0xa8   :  { %3996 = vmatpush.bf16.msra.mxu1 %v6402_v61  ;;  %v1023_v61 = vunpack.c.l.b16 %v88_v56 }
  0xa9   :  { %4009 = vmatpush.bf16.msra.mxu2 %v6410_v62  ;;  %v1025_v62 = vunpack.c.l.b16 %v89_v57  ;;  %v6503_v57 = vld [vmem:[#allocation4 + $0x778] sm:$0xff] }
  0xaa   :  { %4022 = vmatpush.bf16.msra.mxu3 %v6418_v63  ;;  %v6432_v63 = vld [vmem:[#allocation4 + $0x540] sm:$0xff]  ;;  %v1078_v8 = vpack.c.b16 %v1023_v61, %v1023_v61 }
  0xab   :  { %3984 = vmatpush.bf16.msra.mxu0 %v6393_v0  ;;  %v6440_v0 = vld [vmem:[#allocation4 + $0x580] sm:$0xff] }
  0xac   :  { %3997 = vmatpush.bf16.msra.mxu1 %v6401_v1  ;;  %v1024_v1 = vunpack.c.h.b16 %v88_v56  ;;  %v6495_v56 = vld [vmem:[#allocation4 + $0x738] sm:$0xff] }
  0xad   :  { %4010 = vmatpush.bf16.msra.mxu2 %v6409_v2  ;;  %v6463_v2 = vld [vmem:[#allocation4 + $0x638] sm:$0xff] }
  0xae   :  { %4023 = vmatpush.bf16.msra.mxu3 %v6417_v5  ;;  %v1079_v11 = vpack.c.b16 %v1024_v1, %v1024_v1 }
  0xaf   :  { %3985 = vmatpush.bf16.msra.mxu0 %v6392_v6  ;;  %v3779_v32 = vpop.f32.mrf.mxu0  ;;  %v6479_v6 = vld [vmem:[#allocation4 + $0x6b8] sm:$0xff] }
  0xb0   :  { %3998 = vmatpush.bf16.msra.mxu1 %v6400_v9  ;;  %v3780_v35 = vadd.f32 %v6702_v29, %v3779_v32  ;;  %v3792_v36 = vpop.f32.mrf.mxu1  ;;  %v1080_v9 = vpack.c.b16 %v1025_v62, %v1025_v62 }
  0xb1   :  { %4011 = vmatpush.bf16.msra.mxu2 %v6408_v10  ;;  %v6487_v10 = vld [vmem:[#allocation4 + $0x6f8] sm:$0xff] }
  0xb2   :  { %4024 = vmatpush.bf16.msra.mxu3 %v6416_v16  ;;  %3986 = vmatmul.bf16.vlgmr.msra.gmra.mxu0 %v1074_v17  ;;  %v3793_v38 = vadd.f32 %v3792_v36, %v3780_v35  ;;  %v6486_v16 = vld [vmem:[#allocation4 + $0x6f0] sm:$0xff]  ;;  %v6461_v17 = vld [vmem:[#allocation4 + $0x628] sm:$0xff] }
  0xb3   :  { %4030 = vmatpush.bf16.msrb.mxu0 %v6431_v12  ;;  %3999 = vmatmul.bf16.vlgmr.msra.gmra.mxu1 %v1075_v20  ;;  %v1081_v12 = vpack.c.b16 %v1026_v4, %v1026_v4  ;;  %v6485_v20 = vld [vmem:[#allocation4 + $0x6e8] sm:$0xff]  ;;  %v6458_v35 = vld [vmem:[#allocation4 + $0x610] sm:$0xff] }
  0xb4   :  { %4043 = vmatpush.bf16.msrb.mxu1 %v6439_v13  ;;  %4012 = vmatmul.bf16.vlgmr.msra.gmra.mxu2 %v1076_v18  ;;  %v6462_v13 = vld [vmem:[#allocation4 + $0x630] sm:$0xff]  ;;  %v6469_v18 = vld [vmem:[#allocation4 + $0x668] sm:$0xff] }
  0xb5   :  { %4056 = vmatpush.bf16.msrb.mxu2 %v6447_v15  ;;  %4025 = vmatmul.bf16.vlgmr.msra.gmra.mxu3 %v1077_v21  ;;  %v6478_v15 = vld [vmem:[#allocation4 + $0x6b0] sm:$0xff]  ;;  %v6460_v21 = vld [vmem:[#allocation4 + $0x620] sm:$0xff] }
  0xb6   :  { %4069 = vmatpush.bf16.msrb.mxu3 %v6455_v19  ;;  %v6477_v19 = vld [vmem:[#allocation4 + $0x6a8] sm:$0xff]  ;;  %v6466_v36 = vld [vmem:[#allocation4 + $0x650] sm:$0xff] }
  0xb7   :  { %4031 = vmatpush.bf16.msrb.mxu0 %v6430_v22  ;;  %v3805_v43 = vpop.f32.mrf.mxu2  ;;  %v3781_v46 = vpop.f32.mrf.mxu0  ;;  %v6468_v22 = vld [vmem:[#allocation4 + $0x660] sm:$0xff]  ;;  %v6510_v4 = vld [vmem:[#allocation4 + $0x7b0] sm:$0xff] }
  0xb8   :  { %4044 = vmatpush.bf16.msrb.mxu1 %v6438_v23  ;;  %v3806_v45 = vadd.f32 %v3805_v43, %v3793_v38  ;;  %v3818_v49 = vpop.f32.mrf.mxu3  ;;  %v3794_v50 = vpop.f32.mrf.mxu1  ;;  %v6476_v23 = vld [vmem:[#allocation4 + $0x6a0] sm:$0xff]  ;;  %v6465_v43 = vld [vmem:[#allocation4 + $0x648] sm:$0xff] }
  0xb9   :  { %4057 = vmatpush.bf16.msrb.mxu2 %v6446_v24  ;;  %v91_v46 = vld [vmem:[#allocation2 + $0x68] sm:$0xff] }
  0xba   :  { %4070 = vmatpush.bf16.msrb.mxu3 %v6454_v25  ;;  %v6854_v52 = vadd.f32 %v3818_v49, %v3806_v45  ;;  %v90_v45 = vld [vmem:[#allocation2 + $0x60] sm:$0xff] }
  0xbb   :  { %4032 = vmatpush.bf16.msrb.mxu0 %v6429_v26  ;;  %v6456_v49 = vld [vmem:[#allocation4 + $0x600] sm:$0xff]  ;;  %v1027_v50 = vunpack.c.l.b16 %v90_v45 }
  0xbc   :  { %4045 = vmatpush.bf16.msrb.mxu1 %v6437_v27  ;;  %v6484_v27 = vld [vmem:[#allocation4 + $0x6e0] sm:$0xff] }
  0xbd   :  { %4058 = vmatpush.bf16.msrb.mxu2 %v6445_v28  ;;  %v6459_v28 = vld [vmem:[#allocation4 + $0x618] sm:$0xff]  ;;  %v1082_v61 = vpack.c.b16 %v1027_v50, %v1027_v50 }
  0xbe   :  { %4071 = vmatpush.bf16.msrb.mxu3 %v6453_v30  ;;  %v6467_v30 = vld [vmem:[#allocation4 + $0x658] sm:$0xff] }
  0xbf   :  { %4033 = vmatpush.bf16.msrb.mxu0 %v6428_v31  ;;  %v3807_v59 = vpop.f32.mrf.mxu2  ;;  %v6475_v31 = vld [vmem:[#allocation4 + $0x698] sm:$0xff] }
  0xc0   :  { %4046 = vmatpush.bf16.msrb.mxu1 %v6436_v33  ;;  %v3820_v5 = vpop.f32.mrf.mxu3  ;;  %v6483_v33 = vld [vmem:[#allocation4 + $0x6d8] sm:$0xff] }
  0xc1   :  { %4059 = vmatpush.bf16.msrb.mxu2 %v6444_v34  ;;  %v6511_v59 = vld [vmem:[#allocation4 + $0x7b8] sm:$0xff]  ;;  %v6518_v5 = vld [vmem:[#allocation4 + $0x7f0] sm:$0xff] }
  0xc2   :  { %4072 = vmatpush.bf16.msrb.mxu3 %v6452_v37  ;;  %v6474_v37 = vld [vmem:[#allocation4 + $0x690] sm:$0xff]  ;;  %v6543_v50 = vld [vmem:[#allocation4 + $0x8b8] sm:$0xff] }
  0xc3   :  { %4034 = vmatpush.bf16.msrb.mxu0 %v6427_v39 }
  0xc4   :  { %4047 = vmatpush.bf16.msrb.mxu1 %v6435_v40 }
  0xc5   :  { %4060 = vmatpush.bf16.msrb.mxu2 %v6443_v41  ;;  %v6482_v41 = vld [vmem:[#allocation4 + $0x6d0] sm:$0xff] }
  0xc6   :  { %4073 = vmatpush.bf16.msrb.mxu3 %v6451_v42  ;;  %v6457_v42 = vld [vmem:[#allocation4 + $0x608] sm:$0xff] }
  0xc7   :  { %4035 = vmatpush.bf16.msrb.mxu0 %v6426_v44  ;;  %v6473_v44 = vld [vmem:[#allocation4 + $0x688] sm:$0xff] }
  0xc8   :  { %4048 = vmatpush.bf16.msrb.mxu1 %v6434_v47 }
  0xc9   :  { %4061 = vmatpush.bf16.msrb.mxu2 %v6442_v48  ;;  %v6481_v48 = vld [vmem:[#allocation4 + $0x6c8] sm:$0xff] }
  0xca   :  { %4074 = vmatpush.bf16.msrb.mxu3 %v6450_v51  ;;  %v1029_v51 = vunpack.c.l.b16 %v91_v46 }
  0xcb   :  { %4036 = vmatpush.bf16.msrb.mxu0 %v6425_v53  ;;  %v6472_v53 = vld [vmem:[#allocation4 + $0x680] sm:$0xff] }
  0xcc   :  { %4049 = vmatpush.bf16.msrb.mxu1 %v6433_v54  ;;  %v1028_v54 = vunpack.c.h.b16 %v90_v45  ;;  %v1084_v62 = vpack.c.b16 %v1029_v51, %v1029_v51  ;;  %v6504_v45 = vld [vmem:[#allocation4 + $0x780] sm:$0xff] }
  0xcd   :  { %4062 = vmatpush.bf16.msrb.mxu2 %v6441_v55  ;;  %v6512_v51 = vld [vmem:[#allocation4 + $0x7c0] sm:$0xff] }
  0xce   :  { %4075 = vmatpush.bf16.msrb.mxu3 %v6449_v58  ;;  %v1030_v58 = vunpack.c.h.b16 %v91_v46 }
  0xcf   :  { %4037 = vmatpush.bf16.msrb.mxu0 %v6424_v60  ;;  %v3831_v24 = vpop.f32.mrf.mxu0  ;;  %v6480_v60 = vld [vmem:[#allocation4 + $0x6c0] sm:$0xff] }
  0xd0   :  { %4050 = vmatpush.bf16.msrb.mxu1 %v6432_v63  ;;  %v3844_v25 = vpop.f32.mrf.mxu1  ;;  %v3832_v26 = vadd.f32 %v3831_v24, %v6854_v52  ;;  %v6464_v52 = vld [vmem:[#allocation4 + $0x640] sm:$0xff]  ;;  %v6519_v63 = vld [vmem:[#allocation4 + $0x7f8] sm:$0xff]  ;;  %v1085_v1 = vpack.c.b16 %v1030_v58, %v1030_v58  ;;  %v6534_v58 = vld [vmem:[#allocation4 + $0x870] sm:$0xff] }
  0xd1   :  { %4063 = vmatpush.bf16.msrb.mxu2 %v6440_v0  ;;  %v1083_v0 = vpack.c.b16 %v1028_v54, %v1028_v54  ;;  %v6515_v24 = vld [vmem:[#allocation4 + $0x7d8] sm:$0xff] }
  0xd2   :  { %4076 = vmatpush.bf16.msrb.mxu3 %v6448_v7  ;;  %4038 = vmatmul.bf16.vlgmr.msrb.gmra.mxu0 %v1078_v8  ;;  %v3845_v29 = vadd.f32 %v3844_v25, %v3832_v26  ;;  %v6501_v7 = vld [vmem:[#allocation4 + $0x768] sm:$0xff]  ;;  %v6551_v54 = vld [vmem:[#allocation4 + $0x8f8] sm:$0xff] }
  0xd3   :  { %4082 = vmatpush.bf16.msra.mxu0 %v6463_v2  ;;  %4051 = vmatmul.bf16.vlgmr.msrb.gmra.mxu1 %v1079_v11  ;;  %v6494_v2 = vld [vmem:[#allocation4 + $0x730] sm:$0xff]  ;;  %v6509_v8 = vld [vmem:[#allocation4 + $0x7a8] sm:$0xff] }
  0xd4   :  { %4095 = vmatpush.bf16.msra.mxu1 %v6471_v3  ;;  %4064 = vmatmul.bf16.vlgmr.msrb.gmra.mxu2 %v1080_v9  ;;  %v6502_v3 = vld [vmem:[#allocation4 + $0x770] sm:$0xff] }
  0xd5   :  { %4108 = vmatpush.bf16.msra.mxu2 %v6479_v6  ;;  %4077 = vmatmul.bf16.vlgmr.msrb.gmra.mxu3 %v1081_v12  ;;  %v6493_v6 = vld [vmem:[#allocation4 + $0x728] sm:$0xff] }
  0xd6   :  { %4121 = vmatpush.bf16.msra.mxu3 %v6487_v10  ;;  %v6517_v10 = vld [vmem:[#allocation4 + $0x7e8] sm:$0xff] }
  0xd7   :  { %4083 = vmatpush.bf16.msra.mxu0 %v6462_v13  ;;  %v3857_v32 = vpop.f32.mrf.mxu2  ;;  %v3833_v39 = vpop.f32.mrf.mxu0  ;;  %v6492_v13 = vld [vmem:[#allocation4 + $0x720] sm:$0xff] }
  0xd8   :  { %4096 = vmatpush.bf16.msra.mxu1 %v6470_v14  ;;  %v6857_v34 = vadd.f32 %v3857_v32, %v3845_v29  ;;  %v3870_v38 = vpop.f32.mrf.mxu3  ;;  %v3846_v40 = vpop.f32.mrf.mxu1  ;;  %v6500_v14 = vld [vmem:[#allocation4 + $0x760] sm:$0xff]  ;;  %v6498_v29 = vld [vmem:[#allocation4 + $0x750] sm:$0xff]  ;;  %v6513_v39 = vld [vmem:[#allocation4 + $0x7c8] sm:$0xff] }
  0xd9   :  { %4109 = vmatpush.bf16.msra.mxu2 %v6478_v15  ;;  %v6508_v15 = vld [vmem:[#allocation4 + $0x7a0] sm:$0xff]  ;;  %v6514_v32 = vld [vmem:[#allocation4 + $0x7d0] sm:$0xff] }
  0xda   :  { %4122 = vmatpush.bf16.msra.mxu3 %v6486_v16  ;;  %v3871_v9 = vadd.f32 %v3870_v38, %v6857_v34  ;;  %v6497_v34 = vld [vmem:[#allocation4 + $0x748] sm:$0xff]  ;;  %v6488_v40 = vld [vmem:[#allocation4 + $0x700] sm:$0xff] }
  0xdb   :  { %4084 = vmatpush.bf16.msra.mxu0 %v6461_v17 }
  0xdc   :  { %4097 = vmatpush.bf16.msra.mxu1 %v6469_v18  ;;  %v6516_v18 = vld [vmem:[#allocation4 + $0x7e0] sm:$0xff] }
  0xdd   :  { %4110 = vmatpush.bf16.msra.mxu2 %v6477_v19  ;;  %v6491_v19 = vld [vmem:[#allocation4 + $0x718] sm:$0xff] }
  0xde   :  { %4123 = vmatpush.bf16.msra.mxu3 %v6485_v20  ;;  %v6499_v20 = vld [vmem:[#allocation4 + $0x758] sm:$0xff] }
  0xdf   :  { %4085 = vmatpush.bf16.msra.mxu0 %v6460_v21  ;;  %v3859_v47 = vpop.f32.mrf.mxu2  ;;  %v6507_v21 = vld [vmem:[#allocation4 + $0x798] sm:$0xff] }
  0xe0   :  { %4098 = vmatpush.bf16.msra.mxu1 %v6468_v22  ;;  %v3872_v55 = vpop.f32.mrf.mxu3  ;;  %v6527_v47 = vld [vmem:[#allocation4 + $0x838] sm:$0xff] }
  0xe1   :  { %4111 = vmatpush.bf16.msra.mxu2 %v6476_v23 }
  0xe2   :  { %4124 = vmatpush.bf16.msra.mxu3 %v6484_v27  ;;  %v6490_v27 = vld [vmem:[#allocation4 + $0x710] sm:$0xff] }
  0xe3   :  { %4086 = vmatpush.bf16.msra.mxu0 %v6459_v28 }
  0xe4   :  { %4099 = vmatpush.bf16.msra.mxu1 %v6467_v30  ;;  %v6506_v30 = vld [vmem:[#allocation4 + $0x790] sm:$0xff] }
  0xe5   :  { %4112 = vmatpush.bf16.msra.mxu2 %v6475_v31 }
  0xe6   :  { %4125 = vmatpush.bf16.msra.mxu3 %v6483_v33  ;;  %v6489_v33 = vld [vmem:[#allocation4 + $0x708] sm:$0xff] }
  0xe7   :  { %4087 = vmatpush.bf16.msra.mxu0 %v6458_v35  ;;  %v6505_v35 = vld [vmem:[#allocation4 + $0x788] sm:$0xff] }
  0xe8   :  { %4100 = vmatpush.bf16.msra.mxu1 %v6466_v36  ;;  %v92_v36 = vld [vmem:[#allocation2 + $0x70] sm:$0xff] }
  0xe9   :  { %4113 = vmatpush.bf16.msra.mxu2 %v6474_v37  ;;  %v93_v37 = vld [vmem:[#allocation2 + $0x78] sm:$0xff]  ;;  %v1032_v46 = vunpack.c.h.b16 %v92_v36 }
  0xea   :  { %4126 = vmatpush.bf16.msra.mxu3 %v6482_v41  ;;  %v1031_v41 = vunpack.c.l.b16 %v92_v36 }
  0xeb   :  { %4088 = vmatpush.bf16.msra.mxu0 %v6457_v42  ;;  %v1033_v42 = vunpack.c.l.b16 %v93_v37  ;;  %v1087_v55 = vpack.c.b16 %v1032_v46, %v1032_v46 }
  0xec   :  { %4101 = vmatpush.bf16.msra.mxu1 %v6465_v43 }
  0xed   :  { %4114 = vmatpush.bf16.msra.mxu2 %v6473_v44  ;;  %v6496_v44 = vld [vmem:[#allocation4 + $0x740] sm:$0xff] }
  0xee   :  { %4127 = vmatpush.bf16.msra.mxu3 %v6481_v48  ;;  %v6535_v48 = vld [vmem:[#allocation4 + $0x878] sm:$0xff] }
  0xef   :  { %4089 = vmatpush.bf16.msra.mxu0 %v6456_v49  ;;  %v3883_v11 = vpop.f32.mrf.mxu0  ;;  %v1034_v49 = vunpack.c.h.b16 %v93_v37  ;;  %v6559_v37 = vld [vmem:[#allocation4 + $0x938] sm:$0xff] }
  0xf0   :  { %4102 = vmatpush.bf16.msra.mxu1 %v6464_v52  ;;  %v3884_v12 = vadd.f32 %v3883_v11, %v3871_v9  ;;  %v3896_v16 = vpop.f32.mrf.mxu1  ;;  %v1086_v52 = vpack.c.b16 %v1031_v41, %v1031_v41  ;;  %v6523_v9 = vld [vmem:[#allocation4 + $0x818] sm:$0xff]  ;;  %v6544_v41 = vld [vmem:[#allocation4 + $0x8c0] sm:$0xff] }
  0xf1   :  { %4115 = vmatpush.bf16.msra.mxu2 %v6472_v53  ;;  %v1088_v53 = vpack.c.b16 %v1033_v42, %v1033_v42  ;;  %v6539_v11 = vld [vmem:[#allocation4 + $0x898] sm:$0xff] }
  0xf2   :  { %4128 = vmatpush.bf16.msra.mxu3 %v6480_v60  ;;  %4090 = vmatmul.bf16.vlgmr.msra.gmra.mxu0 %v1082_v61  ;;  %v3897_v17 = vadd.f32 %v3896_v16, %v3884_v12  ;;  %v6550_v60 = vld [vmem:[#allocation4 + $0x8f0] sm:$0xff]  ;;  %v6525_v61 = vld [vmem:[#allocation4 + $0x828] sm:$0xff] }
  0xf3   :  { %4134 = vmatpush.bf16.msrb.mxu0 %v6495_v56  ;;  %4103 = vmatmul.bf16.vlgmr.msra.gmra.mxu1 %v1083_v0  ;;  %v1089_v56 = vpack.c.b16 %v1034_v49, %v1034_v49  ;;  %v6549_v0 = vld [vmem:[#allocation4 + $0x8e8] sm:$0xff]  ;;  %v6574_v49 = vld [vmem:[#allocation4 + $0x9b0] sm:$0xff] }
  0xf4   :  { %4147 = vmatpush.bf16.msrb.mxu1 %v6503_v57  ;;  %4116 = vmatmul.bf16.vlgmr.msra.gmra.mxu2 %v1084_v62  ;;  %v6526_v57 = vld [vmem:[#allocation4 + $0x830] sm:$0xff]  ;;  %v6533_v62 = vld [vmem:[#allocation4 + $0x868] sm:$0xff] }
  0xf5   :  { %4160 = vmatpush.bf16.msrb.mxu2 %v6511_v59  ;;  %4129 = vmatmul.bf16.vlgmr.msra.gmra.mxu3 %v1085_v1  ;;  %v6542_v59 = vld [vmem:[#allocation4 + $0x8b0] sm:$0xff] }
  0xf6   :  { %4173 = vmatpush.bf16.msrb.mxu3 %v6519_v63  ;;  %v6541_v63 = vld [vmem:[#allocation4 + $0x8a8] sm:$0xff] }
  0xf7   :  { %4135 = vmatpush.bf16.msrb.mxu0 %v6494_v2  ;;  %v3909_v22 = vpop.f32.mrf.mxu2  ;;  %v3885_v25 = vpop.f32.mrf.mxu0 }
  0xf8   :  { %4148 = vmatpush.bf16.msrb.mxu1 %v6502_v3  ;;  %v3910_v23 = vadd.f32 %v3909_v22, %v3897_v17  ;;  %v3922_v26 = vpop.f32.mrf.mxu3  ;;  %v3898_v31 = vpop.f32.mrf.mxu1  ;;  %v6524_v3 = vld [vmem:[#allocation4 + $0x820] sm:$0xff]  ;;  %v6522_v17 = vld [vmem:[#allocation4 + $0x810] sm:$0xff]  ;;  %v6537_v25 = vld [vmem:[#allocation4 + $0x888] sm:$0xff] }
  0xf9   :  { %4161 = vmatpush.bf16.msrb.mxu2 %v6510_v4  ;;  %v6546_v22 = vld [vmem:[#allocation4 + $0x8d0] sm:$0xff]  ;;  %v6520_v31 = vld [vmem:[#allocation4 + $0x800] sm:$0xff] }
  0xfa   :  { %4174 = vmatpush.bf16.msrb.mxu3 %v6518_v5  ;;  %v6860_v28 = vadd.f32 %v3922_v26, %v3910_v23  ;;  %v6532_v5 = vld [vmem:[#allocation4 + $0x860] sm:$0xff]  ;;  %v6521_v23 = vld [vmem:[#allocation4 + $0x808] sm:$0xff] }
  0xfb   :  { %4136 = vmatpush.bf16.msrb.mxu0 %v6493_v6  ;;  %v6540_v6 = vld [vmem:[#allocation4 + $0x8a0] sm:$0xff] }
  0xfc   :  { %4149 = vmatpush.bf16.msrb.mxu1 %v6501_v7  ;;  %v94_v26 = vld [vmem:[#allocation2 + $0x80] sm:$0xff] }
  0xfd   :  { %4162 = vmatpush.bf16.msrb.mxu2 %v6509_v8  ;;  %v6548_v8 = vld [vmem:[#allocation4 + $0x8e0] sm:$0xff]  ;;  %v1036_v36 = vunpack.c.h.b16 %v94_v26 }
  0xfe   :  { %4175 = vmatpush.bf16.msrb.mxu3 %v6517_v10  ;;  %v6531_v10 = vld [vmem:[#allocation4 + $0x858] sm:$0xff] }
  0xff   :  { %4137 = vmatpush.bf16.msrb.mxu0 %v6492_v13  ;;  %v3911_v38 = vpop.f32.mrf.mxu2 }
 0x100   :  { %4150 = vmatpush.bf16.msrb.mxu1 %v6500_v14  ;;  %v3924_v43 = vpop.f32.mrf.mxu3  ;;  %v6547_v14 = vld [vmem:[#allocation4 + $0x8d8] sm:$0xff] }
 0x101   :  { %4163 = vmatpush.bf16.msrb.mxu2 %v6508_v15  ;;  %v6567_v38 = vld [vmem:[#allocation4 + $0x978] sm:$0xff] }
 0x102   :  { %4176 = vmatpush.bf16.msrb.mxu3 %v6516_v18 }
 0x103   :  { %4138 = vmatpush.bf16.msrb.mxu0 %v6491_v19 }
 0x104   :  { %4151 = vmatpush.bf16.msrb.mxu1 %v6499_v20  ;;  %v6530_v20 = vld [vmem:[#allocation4 + $0x850] sm:$0xff] }
 0x105   :  { %4164 = vmatpush.bf16.msrb.mxu2 %v6507_v21  ;;  %v6538_v21 = vld [vmem:[#allocation4 + $0x890] sm:$0xff] }
 0x106   :  { %4177 = vmatpush.bf16.msrb.mxu3 %v6515_v24  ;;  %v6529_v24 = vld [vmem:[#allocation4 + $0x848] sm:$0xff] }
 0x107   :  { %4139 = vmatpush.bf16.msrb.mxu0 %v6490_v27  ;;  %v95_v27 = vld [vmem:[#allocation2 + $0x88] sm:$0xff] }
 0x108   :  { %4152 = vmatpush.bf16.msrb.mxu1 %v6498_v29  ;;  %v6545_v29 = vld [vmem:[#allocation4 + $0x8c8] sm:$0xff] }
 0x109   :  { %4165 = vmatpush.bf16.msrb.mxu2 %v6506_v30 }
 0x10a   :  { %4178 = vmatpush.bf16.msrb.mxu3 %v6514_v32  ;;  %v1035_v32 = vunpack.c.l.b16 %v94_v26 }
 0x10b   :  { %4140 = vmatpush.bf16.msrb.mxu0 %v6489_v33  ;;  %v1037_v33 = vunpack.c.l.b16 %v95_v27 }
 0x10c   :  { %4153 = vmatpush.bf16.msrb.mxu1 %v6497_v34  ;;  %v6528_v34 = vld [vmem:[#allocation4 + $0x840] sm:$0xff]  ;;  %v1090_v42 = vpack.c.b16 %v1035_v32, %v1035_v32 }
 0x10d   :  { %4166 = vmatpush.bf16.msrb.mxu2 %v6505_v35  ;;  %v6536_v35 = vld [vmem:[#allocation4 + $0x880] sm:$0xff]  ;;  %v1092_v43 = vpack.c.b16 %v1037_v33, %v1037_v33 }
 0x10e   :  { %4179 = vmatpush.bf16.msrb.mxu3 %v6513_v39  ;;  %v1038_v39 = vunpack.c.h.b16 %v95_v27  ;;  %v6591_v27 = vld [vmem:[#allocation4 + $0xa38] sm:$0xff] }
 0x10f   :  { %4141 = vmatpush.bf16.msrb.mxu0 %v6488_v40  ;;  %v3935_v1 = vpop.f32.mrf.mxu0  ;;  %v6575_v40 = vld [vmem:[#allocation4 + $0x9b8] sm:$0xff] }
 0x110   :  { %4154 = vmatpush.bf16.msrb.mxu1 %v6496_v44  ;;  %v3936_v2 = vadd.f32 %v3935_v1, %v6860_v28  ;;  %v3948_v4 = vpop.f32.mrf.mxu1  ;;  %v6583_v44 = vld [vmem:[#allocation4 + $0x9f8] sm:$0xff]  ;;  %v1093_v46 = vpack.c.b16 %v1038_v39, %v1038_v39  ;;  %v6606_v39 = vld [vmem:[#allocation4 + $0xab0] sm:$0xff] }
 0x111   :  { %4167 = vmatpush.bf16.msrb.mxu2 %v6504_v45  ;;  %v1091_v45 = vpack.c.b16 %v1036_v36, %v1036_v36  ;;  %v6571_v1 = vld [vmem:[#allocation4 + $0x998] sm:$0xff] }
 0x112   :  { %4180 = vmatpush.bf16.msrb.mxu3 %v6512_v51  ;;  %4142 = vmatmul.bf16.vlgmr.msrb.gmra.mxu0 %v1086_v52  ;;  %v3949_v7 = vadd.f32 %v3948_v4, %v3936_v2  ;;  %v6557_v51 = vld [vmem:[#allocation4 + $0x928] sm:$0xff]  ;;  %v6579_v4 = vld [vmem:[#allocation4 + $0x9d8] sm:$0xff] }
 0x113   :  { %4186 = vmatpush.bf16.msra.mxu0 %v6527_v47  ;;  %4155 = vmatmul.bf16.vlgmr.msrb.gmra.mxu1 %v1087_v55  ;;  %v6558_v47 = vld [vmem:[#allocation4 + $0x930] sm:$0xff]  ;;  %v6565_v52 = vld [vmem:[#allocation4 + $0x968] sm:$0xff] }
 0x114   :  { %4199 = vmatpush.bf16.msra.mxu1 %v6535_v48  ;;  %4168 = vmatmul.bf16.vlgmr.msrb.gmra.mxu2 %v1088_v53  ;;  %v6566_v48 = vld [vmem:[#allocation4 + $0x970] sm:$0xff]  ;;  %v6573_v53 = vld [vmem:[#allocation4 + $0x9a8] sm:$0xff] }
 0x115   :  { %4212 = vmatpush.bf16.msra.mxu2 %v6543_v50  ;;  %4181 = vmatmul.bf16.vlgmr.msrb.gmra.mxu3 %v1089_v56  ;;  %v6582_v50 = vld [vmem:[#allocation4 + $0x9f0] sm:$0xff] }
 0x116   :  { %4225 = vmatpush.bf16.msra.mxu3 %v6551_v54  ;;  %v6581_v54 = vld [vmem:[#allocation4 + $0x9e8] sm:$0xff] }
 0x117   :  { %4187 = vmatpush.bf16.msra.mxu0 %v6526_v57  ;;  %v3961_v12 = vpop.f32.mrf.mxu2  ;;  %v3937_v16 = vpop.f32.mrf.mxu0  ;;  %v6556_v57 = vld [vmem:[#allocation4 + $0x920] sm:$0xff] }
 0x118   :  { %4200 = vmatpush.bf16.msra.mxu1 %v6534_v58  ;;  %v3962_v13 = vadd.f32 %v3961_v12, %v3949_v7  ;;  %v3974_v15 = vpop.f32.mrf.mxu3  ;;  %v3950_v18 = vpop.f32.mrf.mxu1  ;;  %v6578_v12 = vld [vmem:[#allocation4 + $0x9d0] sm:$0xff] }
 0x119   :  { %4213 = vmatpush.bf16.msra.mxu2 %v6542_v59  ;;  %v6564_v59 = vld [vmem:[#allocation4 + $0x960] sm:$0xff]  ;;  %v96_v16 = vld [vmem:[#allocation2 + $0x90] sm:$0xff] }
 0x11a   :  { %4226 = vmatpush.bf16.msra.mxu3 %v6550_v60  ;;  %v6863_v19 = vadd.f32 %v3974_v15, %v3962_v13  ;;  %v6572_v60 = vld [vmem:[#allocation4 + $0x9a0] sm:$0xff]  ;;  %v6553_v13 = vld [vmem:[#allocation4 + $0x908] sm:$0xff]  ;;  %v1040_v26 = vunpack.c.h.b16 %v96_v16 }
 0x11b   :  { %4188 = vmatpush.bf16.msra.mxu0 %v6525_v61  ;;  %v6569_v15 = vld [vmem:[#allocation4 + $0x988] sm:$0xff] }
 0x11c   :  { %4201 = vmatpush.bf16.msra.mxu1 %v6533_v62  ;;  %v6580_v62 = vld [vmem:[#allocation4 + $0x9e0] sm:$0xff] }
 0x11d   :  { %4214 = vmatpush.bf16.msra.mxu2 %v6541_v63  ;;  %v6555_v63 = vld [vmem:[#allocation4 + $0x918] sm:$0xff] }
 0x11e   :  { %4227 = vmatpush.bf16.msra.mxu3 %v6549_v0  ;;  %v6563_v0 = vld [vmem:[#allocation4 + $0x958] sm:$0xff] }
 0x11f   :  { %4189 = vmatpush.bf16.msra.mxu0 %v6524_v3  ;;  %v3963_v28 = vpop.f32.mrf.mxu2 }
 0x120   :  { %4202 = vmatpush.bf16.msra.mxu1 %v6532_v5  ;;  %v3976_v30 = vpop.f32.mrf.mxu3  ;;  %v6599_v28 = vld [vmem:[#allocation4 + $0xa78] sm:$0xff] }
 0x121   :  { %4215 = vmatpush.bf16.msra.mxu2 %v6540_v6  ;;  %v6607_v30 = vld [vmem:[#allocation4 + $0xab8] sm:$0xff] }
 0x122   :  { %4228 = vmatpush.bf16.msra.mxu3 %v6548_v8  ;;  %v6554_v8 = vld [vmem:[#allocation4 + $0x910] sm:$0xff] }
 0x123   :  { %4190 = vmatpush.bf16.msra.mxu0 %v6523_v9 }
 0x124   :  { %4203 = vmatpush.bf16.msra.mxu1 %v6531_v10  ;;  %v6562_v10 = vld [vmem:[#allocation4 + $0x950] sm:$0xff] }
 0x125   :  { %4216 = vmatpush.bf16.msra.mxu2 %v6539_v11  ;;  %v6570_v11 = vld [vmem:[#allocation4 + $0x990] sm:$0xff] }
 0x126   :  { %4229 = vmatpush.bf16.msra.mxu3 %v6547_v14  ;;  %v6561_v14 = vld [vmem:[#allocation4 + $0x948] sm:$0xff] }
 0x127   :  { %4191 = vmatpush.bf16.msra.mxu0 %v6522_v17  ;;  %v97_v17 = vld [vmem:[#allocation2 + $0x98] sm:$0xff] }
 0x128   :  { %4204 = vmatpush.bf16.msra.mxu1 %v6530_v20 }
 0x129   :  { %4217 = vmatpush.bf16.msra.mxu2 %v6538_v21  ;;  %v6552_v21 = vld [vmem:[#allocation4 + $0x900] sm:$0xff] }
 0x12a   :  { %4230 = vmatpush.bf16.msra.mxu3 %v6546_v22  ;;  %v1039_v22 = vunpack.c.l.b16 %v96_v16 }
 0x12b   :  { %4192 = vmatpush.bf16.msra.mxu0 %v6521_v23  ;;  %v1041_v23 = vunpack.c.l.b16 %v97_v17 }
 0x12c   :  { %4205 = vmatpush.bf16.msra.mxu1 %v6529_v24  ;;  %v6560_v24 = vld [vmem:[#allocation4 + $0x940] sm:$0xff]  ;;  %v1094_v32 = vpack.c.b16 %v1039_v22, %v1039_v22 }
 0x12d   :  { %4218 = vmatpush.bf16.msra.mxu2 %v6537_v25  ;;  %v6568_v25 = vld [vmem:[#allocation4 + $0x980] sm:$0xff]  ;;  %v1096_v33 = vpack.c.b16 %v1041_v23, %v1041_v23 }
 0x12e   :  { %4231 = vmatpush.bf16.msra.mxu3 %v6545_v29  ;;  %v1042_v29 = vunpack.c.h.b16 %v97_v17  ;;  %v6623_v17 = vld [vmem:[#allocation4 + $0xb38] sm:$0xff] }
 0x12f   :  { %4193 = vmatpush.bf16.msra.mxu0 %v6520_v31  ;;  %v3987_v55 = vpop.f32.mrf.mxu0  ;;  %v6576_v31 = vld [vmem:[#allocation4 + $0x9c0] sm:$0xff] }
 0x130   :  { %4206 = vmatpush.bf16.msra.mxu1 %v6528_v34  ;;  %v3988_v56 = vadd.f32 %v3987_v55, %v6863_v19  ;;  %v4000_v58 = vpop.f32.mrf.mxu1  ;;  %v6577_v19 = vld [vmem:[#allocation4 + $0x9c8] sm:$0xff]  ;;  %v6615_v34 = vld [vmem:[#allocation4 + $0xaf8] sm:$0xff]  ;;  %v1097_v36 = vpack.c.b16 %v1042_v29, %v1042_v29  ;;  %v6638_v29 = vld [vmem:[#allocation4 + $0xbb0] sm:$0xff] }
 0x131   :  { %4219 = vmatpush.bf16.msra.mxu2 %v6536_v35  ;;  %v1095_v35 = vpack.c.b16 %v1040_v26, %v1040_v26  ;;  %v6603_v55 = vld [vmem:[#allocation4 + $0xa98] sm:$0xff] }
 0x132   :  { %4232 = vmatpush.bf16.msra.mxu3 %v6544_v41  ;;  %4194 = vmatmul.bf16.vlgmr.msra.gmra.mxu0 %v1090_v42  ;;  %v4001_v61 = vadd.f32 %v4000_v58, %v3988_v56  ;;  %v6589_v41 = vld [vmem:[#allocation4 + $0xa28] sm:$0xff]  ;;  %v6611_v58 = vld [vmem:[#allocation4 + $0xad8] sm:$0xff] }
 0x133   :  { %4238 = vmatpush.bf16.msrb.mxu0 %v6559_v37  ;;  %4207 = vmatmul.bf16.vlgmr.msra.gmra.mxu1 %v1091_v45  ;;  %v6590_v37 = vld [vmem:[#allocation4 + $0xa30] sm:$0xff]  ;;  %v6597_v42 = vld [vmem:[#allocation4 + $0xa68] sm:$0xff] }
 0x134   :  { %4251 = vmatpush.bf16.msrb.mxu1 %v6567_v38  ;;  %4220 = vmatmul.bf16.vlgmr.msra.gmra.mxu2 %v1092_v43  ;;  %v6598_v38 = vld [vmem:[#allocation4 + $0xa70] sm:$0xff]  ;;  %v6605_v43 = vld [vmem:[#allocation4 + $0xaa8] sm:$0xff] }
 0x135   :  { %4264 = vmatpush.bf16.msrb.mxu2 %v6575_v40  ;;  %4233 = vmatmul.bf16.vlgmr.msra.gmra.mxu3 %v1093_v46  ;;  %v6614_v40 = vld [vmem:[#allocation4 + $0xaf0] sm:$0xff] }
 0x136   :  { %4277 = vmatpush.bf16.msrb.mxu3 %v6583_v44  ;;  %v6613_v44 = vld [vmem:[#allocation4 + $0xae8] sm:$0xff] }
 0x137   :  { %4239 = vmatpush.bf16.msrb.mxu0 %v6558_v47  ;;  %v4013_v2 = vpop.f32.mrf.mxu2  ;;  %v3989_v6 = vpop.f32.mrf.mxu0  ;;  %v6588_v47 = vld [vmem:[#allocation4 + $0xa20] sm:$0xff] }
 0x138   :  { %4252 = vmatpush.bf16.msrb.mxu1 %v6566_v48  ;;  %v4014_v3 = vadd.f32 %v4013_v2, %v4001_v61  ;;  %v4026_v5 = vpop.f32.mrf.mxu3  ;;  %v4002_v9 = vpop.f32.mrf.mxu1  ;;  %v6610_v2 = vld [vmem:[#allocation4 + $0xad0] sm:$0xff]  ;;  %v98_v6 = vld [vmem:[#allocation2 + $0xa0] sm:$0xff] }
 0x139   :  { %4265 = vmatpush.bf16.msrb.mxu2 %v6574_v49  ;;  %v6596_v49 = vld [vmem:[#allocation4 + $0xa60] sm:$0xff]  ;;  %v6609_v9 = vld [vmem:[#allocation4 + $0xac8] sm:$0xff]  ;;  %v1044_v16 = vunpack.c.h.b16 %v98_v6 }
 0x13a   :  { %4278 = vmatpush.bf16.msrb.mxu3 %v6582_v50  ;;  %v6866_v7 = vadd.f32 %v4026_v5, %v4014_v3  ;;  %v6604_v50 = vld [vmem:[#allocation4 + $0xaa0] sm:$0xff]  ;;  %v6585_v3 = vld [vmem:[#allocation4 + $0xa08] sm:$0xff] }
 0x13b   :  { %4240 = vmatpush.bf16.msrb.mxu0 %v6557_v51  ;;  %v6601_v5 = vld [vmem:[#allocation4 + $0xa88] sm:$0xff] }
 0x13c   :  { %4253 = vmatpush.bf16.msrb.mxu1 %v6565_v52  ;;  %v6612_v52 = vld [vmem:[#allocation4 + $0xae0] sm:$0xff] }
 0x13d   :  { %4266 = vmatpush.bf16.msrb.mxu2 %v6573_v53  ;;  %v6587_v53 = vld [vmem:[#allocation4 + $0xa18] sm:$0xff] }
 0x13e   :  { %4279 = vmatpush.bf16.msrb.mxu3 %v6581_v54  ;;  %v6595_v54 = vld [vmem:[#allocation4 + $0xa58] sm:$0xff] }
 0x13f   :  { %4241 = vmatpush.bf16.msrb.mxu0 %v6556_v57  ;;  %v4015_v18 = vpop.f32.mrf.mxu2 }
 0x140   :  { %4254 = vmatpush.bf16.msrb.mxu1 %v6564_v59  ;;  %v4028_v20 = vpop.f32.mrf.mxu3  ;;  %v6631_v18 = vld [vmem:[#allocation4 + $0xb78] sm:$0xff] }
 0x141   :  { %4267 = vmatpush.bf16.msrb.mxu2 %v6572_v60  ;;  %v6639_v20 = vld [vmem:[#allocation4 + $0xbb8] sm:$0xff] }
 0x142   :  { %4280 = vmatpush.bf16.msrb.mxu3 %v6580_v62  ;;  %v6586_v62 = vld [vmem:[#allocation4 + $0xa10] sm:$0xff] }
 0x143   :  { %4242 = vmatpush.bf16.msrb.mxu0 %v6555_v63 }
 0x144   :  { %4255 = vmatpush.bf16.msrb.mxu1 %v6563_v0  ;;  %v6594_v0 = vld [vmem:[#allocation4 + $0xa50] sm:$0xff] }
 0x145   :  { %4268 = vmatpush.bf16.msrb.mxu2 %v6571_v1  ;;  %v6602_v1 = vld [vmem:[#allocation4 + $0xa90] sm:$0xff] }
 0x146   :  { %4281 = vmatpush.bf16.msrb.mxu3 %v6579_v4  ;;  %v6593_v4 = vld [vmem:[#allocation4 + $0xa48] sm:$0xff] }
 0x147   :  { %4243 = vmatpush.bf16.msrb.mxu0 %v6554_v8 }
 0x148   :  { %4256 = vmatpush.bf16.msrb.mxu1 %v6562_v10 }
 0x149   :  { %4269 = vmatpush.bf16.msrb.mxu2 %v6570_v11  ;;  %v6584_v11 = vld [vmem:[#allocation4 + $0xa00] sm:$0xff] }
 0x14a   :  { %4282 = vmatpush.bf16.msrb.mxu3 %v6578_v12  ;;  %v1043_v12 = vunpack.c.l.b16 %v98_v6 }
 0x14b   :  { %4244 = vmatpush.bf16.msrb.mxu0 %v6553_v13 }
 0x14c   :  { %4257 = vmatpush.bf16.msrb.mxu1 %v6561_v14  ;;  %v6592_v14 = vld [vmem:[#allocation4 + $0xa40] sm:$0xff]  ;;  %v1098_v22 = vpack.c.b16 %v1043_v12, %v1043_v12 }
 0x14d   :  { %4270 = vmatpush.bf16.msrb.mxu2 %v6569_v15  ;;  %v6600_v15 = vld [vmem:[#allocation4 + $0xa80] sm:$0xff] }
 0x14e   :  { %4283 = vmatpush.bf16.msrb.mxu3 %v6577_v19 }
 0x14f   :  { %4245 = vmatpush.bf16.msrb.mxu0 %v6552_v21  ;;  %v4039_v45 = vpop.f32.mrf.mxu0  ;;  %v6608_v21 = vld [vmem:[#allocation4 + $0xac0] sm:$0xff] }
 0x150   :  { %4258 = vmatpush.bf16.msrb.mxu1 %v6560_v24  ;;  %v4040_v46 = vadd.f32 %v4039_v45, %v6866_v7  ;;  %v4052_v48 = vpop.f32.mrf.mxu1  ;;  %v99_v7 = vld [vmem:[#allocation2 + $0xa8] sm:$0xff]  ;;  %v6647_v24 = vld [vmem:[#allocation4 + $0xbf8] sm:$0xff] }
 0x151   :  { %4271 = vmatpush.bf16.msrb.mxu2 %v6568_v25  ;;  %v1045_v13 = vunpack.c.l.b16 %v99_v7  ;;  %v1046_v19 = vunpack.c.h.b16 %v99_v7  ;;  %v1099_v25 = vpack.c.b16 %v1044_v16, %v1044_v16  ;;  %v6635_v45 = vld [vmem:[#allocation4 + $0xb98] sm:$0xff] }
 0x152   :  { %4284 = vmatpush.bf16.msrb.mxu3 %v6576_v31  ;;  %4246 = vmatmul.bf16.vlgmr.msrb.gmra.mxu0 %v1094_v32  ;;  %v4053_v51 = vadd.f32 %v4052_v48, %v4040_v46  ;;  %v6621_v31 = vld [vmem:[#allocation4 + $0xb28] sm:$0xff]  ;;  %v6643_v48 = vld [vmem:[#allocation4 + $0xbd8] sm:$0xff] }
 0x153   :  { %4290 = vmatpush.bf16.msra.mxu0 %v6591_v27  ;;  %4259 = vmatmul.bf16.vlgmr.msrb.gmra.mxu1 %v1095_v35  ;;  %v1100_v23 = vpack.c.b16 %v1045_v13, %v1045_v13  ;;  %v1101_v26 = vpack.c.b16 %v1046_v19, %v1046_v19  ;;  %v6622_v27 = vld [vmem:[#allocation4 + $0xb30] sm:$0xff]  ;;  %v6629_v32 = vld [vmem:[#allocation4 + $0xb68] sm:$0xff]  ;;  %v6655_v7 = vld [vmem:[#allocation4 + $0xc38] sm:$0xff] }
 0x154   :  { %4303 = vmatpush.bf16.msra.mxu1 %v6599_v28  ;;  %4272 = vmatmul.bf16.vlgmr.msrb.gmra.mxu2 %v1096_v33  ;;  %v6630_v28 = vld [vmem:[#allocation4 + $0xb70] sm:$0xff]  ;;  %v6637_v33 = vld [vmem:[#allocation4 + $0xba8] sm:$0xff] }
 0x155   :  { %4316 = vmatpush.bf16.msra.mxu2 %v6607_v30  ;;  %4285 = vmatmul.bf16.vlgmr.msrb.gmra.mxu3 %v1097_v36  ;;  %v6646_v30 = vld [vmem:[#allocation4 + $0xbf0] sm:$0xff] }
 0x156   :  { %4329 = vmatpush.bf16.msra.mxu3 %v6615_v34  ;;  %v6645_v34 = vld [vmem:[#allocation4 + $0xbe8] sm:$0xff]  ;;  %v6670_v19 = vld [vmem:[#allocation4 + $0xcb0] sm:$0xff] }
 0x157   :  { %4291 = vmatpush.bf16.msra.mxu0 %v6590_v37  ;;  %v4065_v56 = vpop.f32.mrf.mxu2  ;;  %v4041_v60 = vpop.f32.mrf.mxu0  ;;  %v6620_v37 = vld [vmem:[#allocation4 + $0xb20] sm:$0xff] }
 0x158   :  { %4304 = vmatpush.bf16.msra.mxu1 %v6598_v38  ;;  %v4066_v57 = vadd.f32 %v4065_v56, %v4053_v51  ;;  %v4078_v59 = vpop.f32.mrf.mxu3  ;;  %v4054_v63 = vpop.f32.mrf.mxu1  ;;  %v6642_v56 = vld [vmem:[#allocation4 + $0xbd0] sm:$0xff] }
 0x159   :  { %4317 = vmatpush.bf16.msra.mxu2 %v6606_v39  ;;  %v6628_v39 = vld [vmem:[#allocation4 + $0xb60] sm:$0xff]  ;;  %v100_v60 = vld [vmem:[#allocation2 + $0xb0] sm:$0xff]  ;;  %v6641_v63 = vld [vmem:[#allocation4 + $0xbc8] sm:$0xff] }
 0x15a   :  { %4330 = vmatpush.bf16.msra.mxu3 %v6614_v40  ;;  %v6869_v61 = vadd.f32 %v4078_v59, %v4066_v57  ;;  %v6636_v40 = vld [vmem:[#allocation4 + $0xba0] sm:$0xff]  ;;  %v6617_v57 = vld [vmem:[#allocation4 + $0xb08] sm:$0xff]  ;;  %v1048_v6 = vunpack.c.h.b16 %v100_v60 }
 0x15b   :  { %4292 = vmatpush.bf16.msra.mxu0 %v6589_v41  ;;  %v6633_v59 = vld [vmem:[#allocation4 + $0xb88] sm:$0xff] }
 0x15c   :  { %4305 = vmatpush.bf16.msra.mxu1 %v6597_v42  ;;  %v6644_v42 = vld [vmem:[#allocation4 + $0xbe0] sm:$0xff] }
 0x15d   :  { %4318 = vmatpush.bf16.msra.mxu2 %v6605_v43  ;;  %v6619_v43 = vld [vmem:[#allocation4 + $0xb18] sm:$0xff] }
 0x15e   :  { %4331 = vmatpush.bf16.msra.mxu3 %v6613_v44  ;;  %v6627_v44 = vld [vmem:[#allocation4 + $0xb58] sm:$0xff] }
 0x15f   :  { %4293 = vmatpush.bf16.msra.mxu0 %v6588_v47  ;;  %v4067_v8 = vpop.f32.mrf.mxu2 }
 0x160   :  { %4306 = vmatpush.bf16.msra.mxu1 %v6596_v49  ;;  %v4080_v10 = vpop.f32.mrf.mxu3  ;;  %v6663_v8 = vld [vmem:[#allocation4 + $0xc78] sm:$0xff] }
 0x161   :  { %4319 = vmatpush.bf16.msra.mxu2 %v6604_v50  ;;  %v6671_v10 = vld [vmem:[#allocation4 + $0xcb8] sm:$0xff] }
 0x162   :  { %4332 = vmatpush.bf16.msra.mxu3 %v6612_v52  ;;  %v6618_v52 = vld [vmem:[#allocation4 + $0xb10] sm:$0xff] }
 0x163   :  { %4294 = vmatpush.bf16.msra.mxu0 %v6587_v53 }
 0x164   :  { %4307 = vmatpush.bf16.msra.mxu1 %v6595_v54  ;;  %v6626_v54 = vld [vmem:[#allocation4 + $0xb50] sm:$0xff] }
 0x165   :  { %4320 = vmatpush.bf16.msra.mxu2 %v6603_v55  ;;  %v6634_v55 = vld [vmem:[#allocation4 + $0xb90] sm:$0xff] }
 0x166   :  { %4333 = vmatpush.bf16.msra.mxu3 %v6611_v58  ;;  %v6625_v58 = vld [vmem:[#allocation4 + $0xb48] sm:$0xff] }
 0x167   :  { %4295 = vmatpush.bf16.msra.mxu0 %v6586_v62 }
 0x168   :  { %4308 = vmatpush.bf16.msra.mxu1 %v6594_v0 }
 0x169   :  { %4321 = vmatpush.bf16.msra.mxu2 %v6602_v1  ;;  %v6616_v1 = vld [vmem:[#allocation4 + $0xb00] sm:$0xff] }
 0x16a   :  { %4334 = vmatpush.bf16.msra.mxu3 %v6610_v2  ;;  %v1047_v2 = vunpack.c.l.b16 %v100_v60 }
 0x16b   :  { %4296 = vmatpush.bf16.msra.mxu0 %v6585_v3 }
 0x16c   :  { %4309 = vmatpush.bf16.msra.mxu1 %v6593_v4  ;;  %v6624_v4 = vld [vmem:[#allocation4 + $0xb40] sm:$0xff]  ;;  %v1102_v12 = vpack.c.b16 %v1047_v2, %v1047_v2 }
 0x16d   :  { %4322 = vmatpush.bf16.msra.mxu2 %v6601_v5  ;;  %v6632_v5 = vld [vmem:[#allocation4 + $0xb80] sm:$0xff] }
 0x16e   :  { %4335 = vmatpush.bf16.msra.mxu3 %v6609_v9 }
 0x16f   :  { %4297 = vmatpush.bf16.msra.mxu0 %v6584_v11  ;;  %v4091_v35 = vpop.f32.mrf.mxu0  ;;  %v6640_v11 = vld [vmem:[#allocation4 + $0xbc0] sm:$0xff] }
 0x170   :  { %4310 = vmatpush.bf16.msra.mxu1 %v6592_v14  ;;  %v4092_v36 = vadd.f32 %v4091_v35, %v6869_v61  ;;  %v4104_v38 = vpop.f32.mrf.mxu1  ;;  %v101_v61 = vld [vmem:[#allocation2 + $0xb8] sm:$0xff] }
 0x171   :  { %4323 = vmatpush.bf16.msra.mxu2 %v6600_v15  ;;  %v1049_v3 = vunpack.c.l.b16 %v101_v61  ;;  %v1050_v9 = vunpack.c.h.b16 %v101_v61  ;;  %v6679_v14 = vld [vmem:[#allocation4 + $0xcf8] sm:$0xff]  ;;  %v1103_v15 = vpack.c.b16 %v1048_v6, %v1048_v6  ;;  %v6656_v61 = vld [vmem:[#allocation4 + $0xc40] sm:$0xff] }
 0x172   :  { %4336 = vmatpush.bf16.msra.mxu3 %v6608_v21  ;;  %4298 = vmatmul.bf16.vlgmr.msra.gmra.mxu0 %v1098_v22  ;;  %v4105_v41 = vadd.f32 %v4104_v38, %v4092_v36  ;;  %v6653_v21 = vld [vmem:[#allocation4 + $0xc28] sm:$0xff]  ;;  %v6667_v35 = vld [vmem:[#allocation4 + $0xc98] sm:$0xff] }
 0x173   :  { %4342 = vmatpush.bf16.msrb.mxu0 %v6623_v17  ;;  %4311 = vmatmul.bf16.vlgmr.msra.gmra.mxu1 %v1099_v25  ;;  %v1104_v13 = vpack.c.b16 %v1049_v3, %v1049_v3  ;;  %v1105_v16 = vpack.c.b16 %v1050_v9, %v1050_v9  ;;  %v6654_v17 = vld [vmem:[#allocation4 + $0xc30] sm:$0xff]  ;;  %v6661_v22 = vld [vmem:[#allocation4 + $0xc68] sm:$0xff]  ;;  %v6675_v38 = vld [vmem:[#allocation4 + $0xcd8] sm:$0xff] }
 0x174   :  { %4355 = vmatpush.bf16.msrb.mxu1 %v6631_v18  ;;  %4324 = vmatmul.bf16.vlgmr.msra.gmra.mxu2 %v1100_v23  ;;  %v6662_v18 = vld [vmem:[#allocation4 + $0xc70] sm:$0xff]  ;;  %v6669_v23 = vld [vmem:[#allocation4 + $0xca8] sm:$0xff]  ;;  %v6672_v3 = vld [vmem:[#allocation4 + $0xcc0] sm:$0xff] }
 0x175   :  { %4368 = vmatpush.bf16.msrb.mxu2 %v6639_v20  ;;  %4337 = vmatmul.bf16.vlgmr.msra.gmra.mxu3 %v1101_v26  ;;  %v6678_v20 = vld [vmem:[#allocation4 + $0xcf0] sm:$0xff] }
 0x176   :  { %4381 = vmatpush.bf16.msrb.mxu3 %v6647_v24  ;;  %v6677_v24 = vld [vmem:[#allocation4 + $0xce8] sm:$0xff] }
 0x177   :  { %4343 = vmatpush.bf16.msrb.mxu0 %v6622_v27  ;;  %v4117_v46 = vpop.f32.mrf.mxu2  ;;  %v4093_v50 = vpop.f32.mrf.mxu0  ;;  %v6652_v27 = vld [vmem:[#allocation4 + $0xc20] sm:$0xff] }
 0x178   :  { %4356 = vmatpush.bf16.msrb.mxu1 %v6630_v28  ;;  %v4118_v47 = vadd.f32 %v4117_v46, %v4105_v41  ;;  %v4130_v49 = vpop.f32.mrf.mxu3  ;;  %v4106_v53 = vpop.f32.mrf.mxu1  ;;  %v6674_v46 = vld [vmem:[#allocation4 + $0xcd0] sm:$0xff]  ;;  %v6657_v50 = vld [vmem:[#allocation4 + $0xc48] sm:$0xff] }
 0x179   :  { %4369 = vmatpush.bf16.msrb.mxu2 %v6638_v29  ;;  %v6660_v29 = vld [vmem:[#allocation4 + $0xc60] sm:$0xff] }
 0x17a   :  { %4382 = vmatpush.bf16.msrb.mxu3 %v6646_v30  ;;  %v6872_v51 = vadd.f32 %v4130_v49, %v4118_v47  ;;  %v6668_v30 = vld [vmem:[#allocation4 + $0xca0] sm:$0xff] }
 0x17b   :  { %4344 = vmatpush.bf16.msrb.mxu0 %v6621_v31  ;;  %v970_v47 = vld [vmem:[#allocation4 + $0xd80] sm:$0xf]  ;;  %v102_v49 = vld [vmem:[#allocation2 + $0xc0] sm:$0xff] }
 0x17c   :  { %4357 = vmatpush.bf16.msrb.mxu1 %v6629_v32  ;;  %v6676_v32 = vld [vmem:[#allocation4 + $0xce0] sm:$0xff]  ;;  %v1052_v60 = vunpack.c.h.b16 %v102_v49 }
 0x17d   :  { %4370 = vmatpush.bf16.msrb.mxu2 %v6637_v33  ;;  %v6651_v33 = vld [vmem:[#allocation4 + $0xc18] sm:$0xff] }
 0x17e   :  { %4383 = vmatpush.bf16.msrb.mxu3 %v6645_v34  ;;  %v6659_v34 = vld [vmem:[#allocation4 + $0xc58] sm:$0xff]  ;;  %v1107_v6 = vpack.c.b16 %v1052_v60, %v1052_v60 }
 0x17f   :  { %4345 = vmatpush.bf16.msrb.mxu0 %v6620_v37  ;;  %v4119_v62 = vpop.f32.mrf.mxu2 }
 0x180   :  { %4358 = vmatpush.bf16.msrb.mxu1 %v6628_v39  ;;  %v4132_v0 = vpop.f32.mrf.mxu3  ;;  %v6664_v62 = vld [vmem:[#allocation4 + $0xc80] sm:$0xff] }
 0x181   :  { %4371 = vmatpush.bf16.msrb.mxu2 %v6636_v40  ;;  %v6695_v0 = vld [vmem:[#allocation4 + $0xd78] sm:$0xff] }
 0x182   :  { %4384 = vmatpush.bf16.msrb.mxu3 %v6644_v42  ;;  %v6650_v42 = vld [vmem:[#allocation4 + $0xc10] sm:$0xff] }
 0x183   :  { %4346 = vmatpush.bf16.msrb.mxu0 %v6619_v43 }
 0x184   :  { %4359 = vmatpush.bf16.msrb.mxu1 %v6627_v44  ;;  %v6658_v44 = vld [vmem:[#allocation4 + $0xc50] sm:$0xff] }
 0x185   :  { %4372 = vmatpush.bf16.msrb.mxu2 %v6635_v45  ;;  %v6666_v45 = vld [vmem:[#allocation4 + $0xc90] sm:$0xff] }
 0x186   :  { %4385 = vmatpush.bf16.msrb.mxu3 %v6643_v48  ;;  %v6649_v48 = vld [vmem:[#allocation4 + $0xc08] sm:$0xff] }
 0x187   :  { %4347 = vmatpush.bf16.msrb.mxu0 %v6618_v52  ;;  %v103_v52 = vld [vmem:[#allocation2 + $0xc8] sm:$0xff] }
 0x188   :  { %4360 = vmatpush.bf16.msrb.mxu1 %v6626_v54  ;;  %v2896_v54 = vunpack.c.l.b16 %v970_v47 }
 0x189   :  { %4373 = vmatpush.bf16.msrb.mxu2 %v6634_v55  ;;  %v6673_v55 = vld [vmem:[#allocation4 + $0xcc8] sm:$0xff] }
 0x18a   :  { %4386 = vmatpush.bf16.msrb.mxu3 %v6642_v56  ;;  %v1051_v56 = vunpack.c.l.b16 %v102_v49  ;;  %v3329_v2 = vpack.c.b16 %v2896_v54, %v2896_v54 }
 0x18b   :  { %4348 = vmatpush.bf16.msrb.mxu0 %v6617_v57 }
 0x18c   :  { %4361 = vmatpush.bf16.msrb.mxu1 %v6625_v58  ;;  %v6648_v58 = vld [vmem:[#allocation4 + $0xc00] sm:$0xff]  ;;  %v3768_v9 = vsel %vm3766_vm0, %v3329_v2, 0 }
 0x18d   :  { %4374 = vmatpush.bf16.msrb.mxu2 %v6633_v59  ;;  %v1053_v59 = vunpack.c.l.b16 %v103_v52 }
 0x18e   :  { %4387 = vmatpush.bf16.msrb.mxu3 %v6641_v63  ;;  %v6687_v63 = vld [vmem:[#allocation4 + $0xd38] sm:$0xff] }
 0x18f   :  { %4349 = vmatpush.bf16.msrb.mxu0 %v6616_v1  ;;  %v4143_v25 = vpop.f32.mrf.mxu0  ;;  %v1054_v1 = vunpack.c.h.b16 %v103_v52 }
 0x190   :  { %4362 = vmatpush.bf16.msrb.mxu1 %v6624_v4  ;;  %v4144_v26 = vadd.f32 %v4143_v25, %v6872_v51  ;;  %v4156_v28 = vpop.f32.mrf.mxu1  ;;  %v6665_v51 = vld [vmem:[#allocation4 + $0xc88] sm:$0xff]  ;;  %v1106_v4 = vpack.c.b16 %v1051_v56, %v1051_v56 }
 0x191   :  { %4375 = vmatpush.bf16.msrb.mxu2 %v6632_v5  ;;  %v1108_v5 = vpack.c.b16 %v1053_v59, %v1053_v59 }
 0x192   :  { %4388 = vmatpush.bf16.msrb.mxu3 %v6640_v11  ;;  %4350 = vmatmul.bf16.vlgmr.msrb.gmra.mxu0 %v1102_v12  ;;  %v4157_v31 = vadd.f32 %v4156_v28, %v4144_v26  ;;  %v6685_v11 = vld [vmem:[#allocation4 + $0xd28] sm:$0xff] }
 0x193   :  { %4394 = vmatpush.bf16.msra.mxu0 %v6655_v7  ;;  %4363 = vmatmul.bf16.vlgmr.msrb.gmra.mxu1 %v1103_v15  ;;  %v1109_v7 = vpack.c.b16 %v1054_v1, %v1054_v1  ;;  %v6693_v12 = vld [vmem:[#allocation4 + $0xd68] sm:$0xff] }
 0x194   :  { %4407 = vmatpush.bf16.msra.mxu1 %v6663_v8  ;;  %4376 = vmatmul.bf16.vlgmr.msrb.gmra.mxu2 %v1104_v13  ;;  %v6686_v8 = vld [vmem:[#allocation4 + $0xd30] sm:$0xff] }
 0x195   :  { %4420 = vmatpush.bf16.msra.mxu2 %v6671_v10  ;;  %4389 = vmatmul.bf16.vlgmr.msrb.gmra.mxu3 %v1105_v16  ;;  %v6694_v10 = vld [vmem:[#allocation4 + $0xd70] sm:$0xff]  ;;  %v6684_v16 = vld [vmem:[#allocation4 + $0xd20] sm:$0xff] }
 0x196   :  { %4433 = vmatpush.bf16.msra.mxu3 %v6679_v14  ;;  %v105_v14 = vld [vmem:[#allocation2 + $0xd8] sm:$0xf] }
 0x197   :  { %4395 = vmatpush.bf16.msra.mxu0 %v6654_v17  ;;  %v4169_v36 = vpop.f32.mrf.mxu2  ;;  %v4145_v40 = vpop.f32.mrf.mxu0 }
 0x198   :  { %4408 = vmatpush.bf16.msra.mxu1 %v6662_v18  ;;  %v4170_v37 = vadd.f32 %v4169_v36, %v4157_v31  ;;  %v4182_v39 = vpop.f32.mrf.mxu3  ;;  %v4158_v43 = vpop.f32.mrf.mxu1  ;;  %v6692_v18 = vld [vmem:[#allocation4 + $0xd60] sm:$0xff]  ;;  %v6690_v31 = vld [vmem:[#allocation4 + $0xd50] sm:$0xff] }
 0x199   :  { %4421 = vmatpush.bf16.msra.mxu2 %v6670_v19  ;;  %v6688_v40 = vld [vmem:[#allocation4 + $0xd40] sm:$0xff] }
 0x19a   :  { %4434 = vmatpush.bf16.msra.mxu3 %v6678_v20  ;;  %v6875_v41 = vadd.f32 %v4182_v39, %v4170_v37  ;;  %v1057_v20 = vunpack.c.l.b16 %v105_v14  ;;  %v4495_v14 = vld [vmem:[%s6932_s3 + $0x48] sm:$0xff] }
 0x19b   :  { %4396 = vmatpush.bf16.msra.mxu0 %v6653_v21  ;;  %v6683_v21 = vld [vmem:[#allocation4 + $0xd18] sm:$0xff] }
 0x19c   :  { %4409 = vmatpush.bf16.msra.mxu1 %v6661_v22  ;;  %v6691_v22 = vld [vmem:[#allocation4 + $0xd58] sm:$0xff]  ;;  %v1112_v25 = vpack.c.b16 %v1057_v20, %v1057_v20  ;;  %v4490_v20 = vld [vmem:[%s6932_s3 + $0x20] sm:$0xff] }
 0x19d   :  { %4422 = vmatpush.bf16.msra.mxu2 %v6669_v23 }
 0x19e   :  { %4435 = vmatpush.bf16.msra.mxu3 %v6677_v24 }
 0x19f   :  { %4397 = vmatpush.bf16.msra.mxu0 %v6652_v27  ;;  %v4171_v53 = vpop.f32.mrf.mxu2 }
 0x1a0   :  { %4410 = vmatpush.bf16.msra.mxu1 %v6660_v29  ;;  %v4184_v57 = vpop.f32.mrf.mxu3  ;;  %v6682_v29 = vld [vmem:[#allocation4 + $0xd10] sm:$0xff] }
 0x1a1   :  { %4423 = vmatpush.bf16.msra.mxu2 %v6668_v30 }
 0x1a2   :  { %4436 = vmatpush.bf16.msra.mxu3 %v6676_v32  ;;  %v6681_v32 = vld [vmem:[#allocation4 + $0xd08] sm:$0xff] }
 0x1a3   :  { %4398 = vmatpush.bf16.msra.mxu0 %v6651_v33  ;;  %v104_v33 = vld [vmem:[#allocation2 + $0xd0] sm:$0xff] }
 0x1a4   :  { %4411 = vmatpush.bf16.msra.mxu1 %v6659_v34  ;;  %v6689_v34 = vld [vmem:[#allocation4 + $0xd48] sm:$0xff]  ;;  %v1055_v36 = vunpack.c.l.b16 %v104_v33  ;;  %v1056_v39 = vunpack.c.h.b16 %v104_v33 }
 0x1a5   :  { %4424 = vmatpush.bf16.msra.mxu2 %v6667_v35 }
 0x1a6   :  { %4437 = vmatpush.bf16.msra.mxu3 %v6675_v38  ;;  %v6680_v38 = vld [vmem:[#allocation4 + $0xd00] sm:$0xff] }
 0x1a7   :  { %4399 = vmatpush.bf16.msra.mxu0 %v6650_v42  ;;  %v1111_v42 = vpack.c.b16 %v1056_v39, %v1056_v39 }
 0x1a8   :  { %4412 = vmatpush.bf16.msra.mxu1 %v6658_v44 }
 0x1a9   :  { %4425 = vmatpush.bf16.msra.mxu2 %v6666_v45 }
 0x1aa   :  { %4438 = vmatpush.bf16.msra.mxu3 %v6674_v46 }
 0x1ab   :  { %4400 = vmatpush.bf16.msra.mxu0 %v6649_v48 }
 0x1ac   :  { %4413 = vmatpush.bf16.msra.mxu1 %v6657_v50 }
 0x1ad   :  { %4426 = vmatpush.bf16.msra.mxu2 %v6665_v51 }
 0x1ae   :  { %4439 = vmatpush.bf16.msra.mxu3 %v6673_v55 }
 0x1af   :  { %4401 = vmatpush.bf16.msra.mxu0 %v6648_v58  ;;  %v4195_v13 = vpop.f32.mrf.mxu0 }
 0x1b0   :  { %4414 = vmatpush.bf16.msra.mxu1 %v6656_v61  ;;  %v4196_v15 = vadd.f32 %v4195_v13, %v6875_v41  ;;  %v4208_v17 = vpop.f32.mrf.mxu1  ;;  %v1110_v41 = vpack.c.b16 %v1055_v36, %v1055_v36 }
 0x1b1   :  { %4427 = vmatpush.bf16.msra.mxu2 %v6664_v62 }
 0x1b2   :  { %4440 = vmatpush.bf16.msra.mxu3 %v6672_v3  ;;  %4402 = vmatmul.bf16.vlgmr.msra.gmra.mxu0 %v1106_v4  ;;  %v4209_v19 = vadd.f32 %v4208_v17, %v4196_v15  ;;  %v4501_v3 = vld [vmem:[%s6932_s3 + $0x78] sm:$0xff] }
 0x1b3   :  { %4446 = vmatpush.bf16.msrb.mxu0 %v6687_v63  ;;  %4415 = vmatmul.bf16.vlgmr.msra.gmra.mxu1 %v1107_v6  ;;  %v4499_v6 = vld [vmem:[%s6932_s3 + $0x68] sm:$0xff]  ;;  %v4493_v17 = vld [vmem:[%s6932_s3 + $0x38] sm:$0xff] }
 0x1b4   :  { %4459 = vmatpush.bf16.msrb.mxu1 %v6695_v0  ;;  %4428 = vmatmul.bf16.vlgmr.msra.gmra.mxu2 %v1108_v5  ;;  %v4500_v5 = vld [vmem:[%s6932_s3 + $0x70] sm:$0xff] }
 0x1b5   :  { %4479 = vmatpush.bf16.msrb.mxu2 %v3768_v9  ;;  %4441 = vmatmul.bf16.vlgmr.msra.gmra.mxu3 %v1109_v7 }
 0x1b6   :  { %4506 = vmatpush.msrb.mxu3 %v4501_v3 }
 0x1b7   :  { %4447 = vmatpush.bf16.msrb.mxu0 %v6686_v8  ;;  %v4221_v23 = vpop.f32.mrf.mxu2  ;;  %v4197_v27 = vpop.f32.mrf.mxu0 }
 0x1b8   :  { %4460 = vmatpush.bf16.msrb.mxu1 %v6694_v10  ;;  %v4222_v24 = vadd.f32 %v4221_v23, %v4209_v19  ;;  %v4234_v26 = vpop.f32.mrf.mxu3  ;;  %v4210_v30 = vpop.f32.mrf.mxu1  ;;  %4507 = vmatpush.msrb.mxu3 %v4500_v5  ;;  %v4498_v10 = vld [vmem:[%s6932_s3 + $0x60] sm:$0xff]  ;;  %v4491_v19 = vld [vmem:[%s6932_s3 + $0x28] sm:$0xff] }
 0x1ba   :  { %v4235_v28 = vadd.f32 %v4234_v26, %v4222_v24  ;;  %4508 = vmatpush.msrb.mxu3 %v4499_v6  ;;  %v4487_v26 = vld [vmem:[%s6932_s3 + $0x8] sm:$0xff] }
 0x1bb   :  { %4448 = vmatpush.bf16.msrb.mxu0 %v6685_v11  ;;  %v4497_v11 = vld [vmem:[%s6932_s3 + $0x58] sm:$0xff] }
 0x1bc   :  { %4461 = vmatpush.bf16.msrb.mxu1 %v6693_v12  ;;  %4509 = vmatpush.msrb.mxu3 %v4498_v10  ;;  %v4496_v12 = vld [vmem:[%s6932_s3 + $0x50] sm:$0xff] }
 0x1be   :  { %4510 = vmatpush.msrb.mxu3 %v4497_v11 }
 0x1bf   :  { %4449 = vmatpush.bf16.msrb.mxu0 %v6684_v16  ;;  %v4223_v35 = vpop.f32.mrf.mxu2  ;;  %v4494_v16 = vld [vmem:[%s6932_s3 + $0x40] sm:$0xff] }
 0x1c0   :  { %4462 = vmatpush.bf16.msrb.mxu1 %v6692_v18  ;;  %v4236_v37 = vpop.f32.mrf.mxu3  ;;  %4511 = vmatpush.msrb.mxu3 %v4496_v12  ;;  %v4492_v18 = vld [vmem:[%s6932_s3 + $0x30] sm:$0xff] }
 0x1c2   :  { %4512 = vmatpush.msrb.mxu3 %v4495_v14 }
 0x1c3   :  { %4450 = vmatpush.bf16.msrb.mxu0 %v6683_v21 }
 0x1c4   :  { %4463 = vmatpush.bf16.msrb.mxu1 %v6691_v22  ;;  %6263 = vmatmul.msk.bf16.vlgmr.msrb.gmra.mxu2 %vm3762_vm1, %v1112_v25  ;;  %v4489_v22 = vld [vmem:[%s6932_s3 + $0x18] sm:$0xff]  ;;  %v4488_v25 = vld [vmem:[%s6932_s3 + $0x10] sm:$0xff] }
 0x1c5   :  { %4513 = vmatpush.msrb.mxu3 %v4494_v16 }
 0x1c7   :  { %4451 = vmatpush.bf16.msrb.mxu0 %v6682_v29  ;;  %4514 = vmatpush.msrb.mxu3 %v4493_v17 }
 0x1c8   :  { %4464 = vmatpush.bf16.msrb.mxu1 %v6690_v31 }
 0x1c9   :  { %4515 = vmatpush.msrb.mxu3 %v4492_v18 }
 0x1cb   :  { %4452 = vmatpush.bf16.msrb.mxu0 %v6681_v32  ;;  %4516 = vmatpush.msrb.mxu3 %v4491_v19 }
 0x1cc   :  { %4465 = vmatpush.bf16.msrb.mxu1 %v6689_v34 }
 0x1cd   :  { %4517 = vmatpush.msrb.mxu3 %v4490_v20 }
 0x1cf   :  { %4453 = vmatpush.bf16.msrb.mxu0 %v6680_v38  ;;  %v4247_v43 = vpop.f32.mrf.mxu0  ;;  %4518 = vmatpush.msrb.mxu3 %v4489_v22 }
 0x1d0   :  { %4466 = vmatpush.bf16.msrb.mxu1 %v6688_v40  ;;  %v4248_v44 = vadd.f32 %v4247_v43, %v4235_v28  ;;  %v4260_v45 = vpop.f32.mrf.mxu1  ;;  %v4486_v28 = vld [vmem:[%s6932_s3] sm:$0xff] }
 0x1d1   :  { %4519 = vmatpush.msrb.mxu3 %v4488_v25 }
 0x1d2   :  { %4454 = vmatmul.bf16.vlgmr.msrb.gmra.mxu0 %v1110_v41  ;;  %v4261_v46 = vadd.f32 %v4260_v45, %v4248_v44 }
 0x1d3   :  { %4467 = vmatmul.bf16.vlgmr.msrb.gmra.mxu1 %v1111_v42  ;;  %4520 = vmatpush.msrb.mxu3 %v4487_v26 }
 0x1d5   :  { %4521 = vmatpush.msrb.mxu3 %v4486_v28 }
 0x1d7   :  { %v4273_v47 = vpop.f32.mrf.mxu2  ;;  %v4249_v50 = vpop.f32.mrf.mxu0 }
 0x1d8   :  { %v4274_v48 = vadd.f32 %v4273_v47, %v4261_v46  ;;  %v4286_v49 = vpop.f32.mrf.mxu3  ;;  %v4262_v52 = vpop.f32.mrf.mxu1 }
 0x1da   :  { %v4287_v51 = vadd.f32 %v4286_v49, %v4274_v48 }
 0x1df   :  { %v4275_v53 = vpop.f32.mrf.mxu2 }
 0x1e0   :  { %v4288_v54 = vpop.f32.mrf.mxu3  ;;  %v6703_v53 = vld [vmem:[#allocation7] ss:$0 sm:$0xff] }
 0x1ef   :  { %v4299_v55 = vpop.f32.mrf.mxu0 }
 0x1f0   :  { %v4300_v56 = vadd.f32 %v4299_v55, %v4287_v51  ;;  %v4312_v57 = vpop.f32.mrf.mxu1 }
 0x1f2   :  { %v4313_v58 = vadd.f32 %v4312_v57, %v4300_v56 }
 0x1f7   :  { %v4325_v59 = vpop.f32.mrf.mxu2  ;;  %v4301_v61 = vpop.f32.mrf.mxu0 }
 0x1f8   :  { %v4338_v60 = vpop.f32.mrf.mxu3  ;;  %v4314_v62 = vpop.f32.mrf.mxu1  ;;  %v4326_v23 = vadd.f32 %v4325_v59, %v4313_v58 }
 0x1fa   :  { %v4339_v27 = vadd.f32 %v4338_v60, %v4326_v23 }
 0x1ff   :  { %v4327_v63 = vpop.f32.mrf.mxu2 }
 0x200   :  { %v4340_v0 = vpop.f32.mrf.mxu3 }
 0x20f   :  { %v4351_v1 = vpop.f32.mrf.mxu0 }
 0x210   :  { %v4364_v2 = vpop.f32.mrf.mxu1  ;;  %v4352_v29 = vadd.f32 %v4351_v1, %v4339_v27 }
 0x212   :  { %v4365_v34 = vadd.f32 %v4364_v2, %v4352_v29 }
 0x217   :  { %v4377_v4 = vpop.f32.mrf.mxu2  ;;  %v4353_v8 = vpop.f32.mrf.mxu0 }
 0x218   :  { %v4390_v7 = vpop.f32.mrf.mxu3  ;;  %v4366_v9 = vpop.f32.mrf.mxu1  ;;  %v4378_v35 = vadd.f32 %v4377_v4, %v4365_v34 }
 0x21a   :  { %v4391_v37 = vadd.f32 %v4390_v7, %v4378_v35 }
 0x21f   :  { %v4379_v13 = vpop.f32.mrf.mxu2 }
 0x220   :  { %v4392_v15 = vpop.f32.mrf.mxu3 }
 0x22f   :  { %v4403_v21 = vpop.f32.mrf.mxu0 }
 0x230   :  { %v4416_v24 = vpop.f32.mrf.mxu1  ;;  %v4404_v39 = vadd.f32 %v4403_v21, %v4391_v37 }
 0x232   :  { %v4417_v40 = vadd.f32 %v4416_v24, %v4404_v39 }
 0x237   :  { %v4429_v30 = vpop.f32.mrf.mxu2  ;;  %v4405_v31 = vpop.f32.mrf.mxu0 }
 0x238   :  { %v4442_v32 = vpop.f32.mrf.mxu3  ;;  %v4418_v33 = vpop.f32.mrf.mxu1  ;;  %v4430_v42 = vadd.f32 %v4429_v30, %v4417_v40 }
 0x23a   :  { %v4443_v43 = vadd.f32 %v4442_v32, %v4430_v42 }
 0x23f   :  { %v4431_v36 = vpop.f32.mrf.mxu2 }
 0x240   :  { %v4444_v38 = vpop.f32.mrf.mxu3 }
 0x247   :  { %v4481_v41 = vpop.f32.mrf.mxu2 }
 0x24f   :  { %v4455_v44 = vpop.f32.mrf.mxu0  ;;  %v4483_v47 = vpop.f32.mrf.mxu2 }
 0x250   :  { %v4456_v45 = vadd.f32 %v4455_v44, %v4443_v43  ;;  %v4468_v46 = vpop.f32.mrf.mxu1 }
 0x252   :  { %v4469_v48 = vadd.f32 %v4468_v46, %v4456_v45 }
 0x254   :  { %v4482_v49 = vadd.f32 %v4481_v41, %v4469_v48 }
 0x256   :  { %v4485_v50 = vmax.f32 %v4482_v49, 0.0 }
 0x257   :  { %v4457_v51 = vpop.f32.mrf.mxu0 }
 0x258   :  { %v4470_v52 = vpop.f32.mrf.mxu1  ;;  %4522 = vmatmul.f32.vlgmr.msrb.gmra.mxu3 %v4485_v50 }
 0x2db   :  { %v4523_v54 = vpop.f32.mrf.mxu3 }
 0x2dc   :  { %v4524_v55 = vadd.f32 %v6703_v53, %v4523_v54 }
 0x2de   :  { %4527 = vst.msk [vmem:[%s6934_s5] sm:$0xff] %vm4526_vm2, %v4524_v55 }
 0x2df   :  { %4532 = vsyncpa [#allocation3], 1 }
 0x2e0   :  { %4533 = vsyncpa [#allocation5], 1 }
 0x2e1   :  { %4534 = vsyncpa [#allocation8], 1 }

</bundles_post_ra>
